<compile_context>
chip_gen: v7x
topology: tpu7x:2x2x1
jax: 0.10.0
libtpu: 0.0.40
codegen_flags: <defaults>
</compile_context>

<pallas_src>
import functools

import jax
import jax.numpy as jnp
import numpy as np
from jax.experimental import pallas as pl
from jax.experimental.pallas import tpu as pltpu

EPS = 1e-5          # PyTorch BatchNorm1d default eps
OUT_FEATURES = 10   # CIFAR-10 classes
LANE = 128          # TPU lane width / padded output columns


# --------------------------------------------------------------------------
# Kernel
# --------------------------------------------------------------------------
def _fc3_kernel(x_ref, w3_ref, g2_ref, be2_ref, w2_ref, g1_ref, be1_ref,
                w1_ref, b1_ref, out_ref, acc_ref):
    k = pl.program_id(0)

    @pl.when(k == 0)
    def _init():
        acc_ref[...] = jnp.zeros_like(acc_ref)

    # ---- Linear-3 partial product for this K-tile.
    # x is streamed as f32 and cast in-register (no standalone HBM cast);
    # accumulate in f32.  (bias b3 dropped: cancelled by the batch-stats BN.)
    acc_ref[...] += jnp.dot(x_ref[...].astype(w3_ref.dtype), w3_ref[...],
                            preferred_element_type=jnp.float32)

    @pl.when(k == pl.num_programs(0) - 1)
    def _finalize():
        h = acc_ref[...]

        # ---- BN (bn_2): batch stats, biased variance, folded scale/shift.
        mu = jnp.mean(h, axis=0, keepdims=True)
        var = jnp.mean(h * h, axis=0, keepdims=True) - mu * mu
        scale = g2_ref[...] * jax.lax.rsqrt(var + EPS)
        shift = be2_ref[...] - mu * scale
        h = jnp.maximum(h * scale + shift, 0.0)                   # BN + ReLU

        # ---- Linear-2 (bias b2 dropped: cancelled by the next batch-stats BN).
        h2 = jnp.dot(h.astype(w2_ref.dtype), w2_ref[...],
                     preferred_element_type=jnp.float32)

        # ---- BN (bn_1): folded scale/shift.
        mu2 = jnp.mean(h2, axis=0, keepdims=True)
        var2 = jnp.mean(h2 * h2, axis=0, keepdims=True) - mu2 * mu2
        scale2 = g1_ref[...] * jax.lax.rsqrt(var2 + EPS)
        shift2 = be1_ref[...] - mu2 * scale2
        h2 = jnp.maximum(h2 * scale2 + shift2, 0.0)               # BN + ReLU

        # ---- Linear-1, padded to a lane-dense 128-wide output (sliced to 10
        # real classes in the wrapper).
        out_ref[...] = jnp.dot(h2.astype(w1_ref.dtype), w1_ref[...],
                               preferred_element_type=jnp.float32) + b1_ref[...]


# --------------------------------------------------------------------------
# VMEM budget (generation-aware)
# --------------------------------------------------------------------------
def _vmem_cap_bytes():
    """Physical-VMEM-aware cap with headroom for Mosaic internal scratch."""
    try:
        phys = int(pltpu.get_tpu_info().vmem_capacity_bytes)
    except Exception:
        phys = 64 << 20                      # conservative default (v7x size)
    if phys >= (96 << 20):                   # v5e / v6e: 128 MiB physical
        return 100 << 20
    return max(phys - (8 << 20), 32 << 20)   # v7x: 64 MiB -> ~56 MiB


# --------------------------------------------------------------------------
# Wrapper
# --------------------------------------------------------------------------
@functools.partial(jax.jit, static_argnames=("tk",))
def fc3_forward(x, kparams, *, tk=1536):
    """x: (N, 3, 32, 32) float32; kparams: output of prepare_kernel_params."""
    n = x.shape[0]
    cdt = kparams["w3"].dtype                 # weight stream dtype (bf16 or f32)
    x_flat = x.reshape(n, -1)                 # NCHW flatten == nn.Flatten; NO cast
    k_total = x_flat.shape[1]                 # 3 * 32 * 32 = 3072
    wp = kparams["w3"].shape[1]               # padded width (multiple of 128/256)
    op = kparams["w1"].shape[1]               # padded output columns (128)

    tk = min(tk, k_total)
    if k_total % tk != 0:                     # keep the grid exact
        tk = k_total
    nk = k_total // tk

    # Explicit scoped-VMEM budget: double-buffered streams + resident weights
    # + accumulator + finalize intermediates, with headroom; generation-aware cap.
    w_item = jnp.dtype(cdt).itemsize
    x_item = jnp.dtype(x_flat.dtype).itemsize
    vmem_bytes = (
        2 * n * tk * x_item              # x K-tiles (f32, double-buffered)
        + 2 * tk * wp * w_item           # w3 K-tiles (double-buffered)
        + 2 * wp * wp * w_item           # w2 (resident; default double-buffered)
        + 2 * wp * op * w_item           # w1 (resident)
        + 2 * (4 * wp + op) * 4          # BN params + b1
        + 2 * n * op * 4                 # output
        + n * wp * 4                     # f32 accumulator scratch
        + 3 * n * wp * 4                 # finalize temporaries (h, h2, bf16 casts)
    )
    vmem_limit = int(min(max(int(1.25 * vmem_bytes), 32 << 20), _vmem_cap_bytes()))

    # NOTE: resident blocks (g2..b1) could be single-buffered via
    # pipeline_mode=pl.Buffered(1) to save a little VMEM; omitted to keep the
    # compile path identical to the validated one.
    grid_spec = pltpu.PrefetchScalarGridSpec(
        num_scalar_prefetch=0,
        grid=(nk,),
        in_specs=[
            pl.BlockSpec((n, tk), lambda k: (0, k)),        # x      (K-streamed, f32)
            pl.BlockSpec((tk, wp), lambda k: (k, 0)),       # w3     (K-streamed)
            pl.BlockSpec((1, wp), lambda k: (0, 0)),        # gamma_2 (resident)
            pl.BlockSpec((1, wp), lambda k: (0, 0)),        # beta_2
            pl.BlockSpec((wp, wp), lambda k: (0, 0)),       # w2
            pl.BlockSpec((1, wp), lambda k: (0, 0)),        # gamma_1
            pl.BlockSpec((1, wp), lambda k: (0, 0)),        # beta_1
            pl.BlockSpec((wp, op), lambda k: (0, 0)),       # w1 (padded cols)
            pl.BlockSpec((1, op), lambda k: (0, 0)),        # b1 (padded)
        ],
        out_specs=pl.BlockSpec((n, op), lambda k: (0, 0)),
        scratch_shapes=[pltpu.VMEM((n, wp), jnp.float32)],
    )

    out_padded = pl.pallas_call(
        _fc3_kernel,
        out_shape=jax.ShapeDtypeStruct((n, op), jnp.float32),
        grid_spec=grid_spec,
        compiler_params=pltpu.CompilerParams(
            dimension_semantics=("arbitrary",),   # K is a reduction axis
            vmem_limit_bytes=vmem_limit,
        ),
    )(x_flat, kparams["w3"], kparams["g2"], kparams["be2"],
      kparams["w2"], kparams["g1"], kparams["be1"],
      kparams["w1"], kparams["b1"])

    return out_padded[:, :OUT_FEATURES]


# --------------------------------------------------------------------------
# Parameter construction / layout
# --------------------------------------------------------------------------
def _round_up(x, m):
    return ((x + m - 1) // m) * m


def _pad2(a, shape):
    out = jnp.zeros(shape, a.dtype)
    return out.at[: a.shape[0], : a.shape[1]].set(a)


def _feature_pad_multiple(width):
    # 256-wide MXU tiles pay off once the matmuls are compute-bound
    # (v6e/v7x MXU is 256x256); 128 (lane width) is enough otherwise.
    return 256 if width >= 512 else LANE


def init_params(key, width):
    """PyTorch-layout params: Linear default init (uniform +-1/sqrt(fan_in)),
    BN gamma=1 / beta=0."""
    d_in = 3 * 32 * 32
    ks = jax.random.split(key, 6)

    def lin(kw, kb, fan_in, fan_out):
        bound = 1.0 / np.sqrt(fan_in)
        w = jax.random.uniform(kw, (fan_out, fan_in), jnp.float32, -bound, bound)
        b = jax.random.uniform(kb, (fan_out,), jnp.float32, -bound, bound)
        return w, b

    w3, b3 = lin(ks[0], ks[1], d_in, width)      # linear_3: 3072 -> W
    w2, b2 = lin(ks[2], ks[3], width, width)     # linear_2: W -> W
    w1, b1 = lin(ks[4], ks[5], width, 10)        # linear_1: W -> 10
    return {
        "w3": w3, "b3": b3, "w2": w2, "b2": b2, "w1": w1, "b1": b1,
        "g2": jnp.ones((width,), jnp.float32), "be2": jnp.zeros((width,), jnp.float32),
        "g1": jnp.ones((width,), jnp.float32), "be1": jnp.zeros((width,), jnp.float32),
    }


def prepare_kernel_params(params, compute_dtype=jnp.bfloat16):
    """Transpose / pad / cast PyTorch-layout params into the kernel layout.

    - Weights become (in, out) and are zero-padded so feature dims are
      multiples of 128 (or 256 for large widths): lane-dense MXU tiles and
      unmasked stores.  Padding is exact since padded weight/gamma/beta
      entries are zero, so padded columns stay identically zero.
    - Weights are cast to `compute_dtype` (bf16 by default) for cheaper DMA
      and full-rate MXU; BN affine params and b1 stay f32.
    - b3 / b2 are dropped: bias-before-batch-stats-BN is exactly cancelled.
    """
    width = params["w2"].shape[0]
    wp = _round_up(width, _feature_pad_multiple(width))
    w3_t = params["w3"].T      # (3072, W)
    w2_t = params["w2"].T      # (W, W)
    w1_t = params["w1"].T      # (W, 10)
    return {
        "w3": _pad2(w3_t, (w3_t.shape[0], wp)).astype(compute_dtype),
        "w2": _pad2(w2_t, (wp, wp)).astype(compute_dtype),
        "w1": _pad2(w1_t, (wp, LANE)).astype(compute_dtype),
        "b1": _pad2(params["b1"][None, :], (1, LANE)).astype(jnp.float32),
        "g2": _pad2(params["g2"][None, :], (1, wp)).astype(jnp.float32),
        "be2": _pad2(params["be2"][None, :], (1, wp)).astype(jnp.float32),
        "g1": _pad2(params["g1"][None, :], (1, wp)).astype(jnp.float32),
        "be1": _pad2(params["be1"][None, :], (1, wp)).astype(jnp.float32),
    }


# --------------------------------------------------------------------------
# Pure-JAX reference (PyTorch semantics, optional matched compute dtype)
# --------------------------------------------------------------------------
def fc3_reference(x, params, compute_dtype=jnp.float32):
    n = x.shape[0]
    cdt = compute_dtype
    h = jnp.dot(x.reshape(n, -1).astype(cdt), params["w3"].T.astype(cdt),
                preferred_element_type=jnp.float32) + params["b3"]
    mu = h.mean(0, keepdims=True)
    var = ((h - mu) ** 2).mean(0, keepdims=True)
    h = jnp.maximum((h - mu) / jnp.sqrt(var + EPS) * params["g2"] + params["be2"], 0.0)
    h = jnp.dot(h.astype(cdt), params["w2"].T.astype(cdt),
                preferred_element_type=jnp.float32) + params["b2"]
    mu = h.mean(0, keepdims=True)
    var = ((h - mu) ** 2).mean(0, keepdims=True)
    h = jnp.maximum((h - mu) / jnp.sqrt(var + EPS) * params["g1"] + params["be1"], 0.0)
    return jnp.dot(h.astype(cdt), params["w1"].T.astype(cdt),
                   preferred_element_type=jnp.float32) + params["b1"]


# --------------------------------------------------------------------------
if __name__ == "__main__":
    key = jax.random.PRNGKey(0)
    k_x, k_p = jax.random.split(key)

    batch, width = 8, 32   # small test shapes (input dims fixed by linear_3: 3*32*32)
    x = jax.random.normal(k_x, (batch, 3, 32, 32), jnp.float32)
    params = init_params(k_p, width)

    # 1) f32 path: tight check against the PyTorch-equivalent reference
    #    (also validates that dropping b3/b2 and the BN scale/shift folding
    #    are numerically exact-enough).
    kp_f32 = prepare_kernel_params(params, compute_dtype=jnp.float32)
    out_f32 = fc3_forward(x, kp_f32)
    jax.block_until_ready(out_f32)
    ref_f32 = fc3_reference(x, params, compute_dtype=jnp.float32)
    np.testing.assert_allclose(np.asarray(out_f32), np.asarray(ref_f32),
                               rtol=5e-4, atol=5e-4)

    # 2) bf16 weight-streaming path (the fast default): check against a
    #    matched-precision reference (same bf16 matmul inputs, f32 accum).
    kp_bf16 = prepare_kernel_params(params, compute_dtype=jnp.bfloat16)
    out_bf16 = fc3_forward(x, kp_bf16)
    jax.block_until_ready(out_bf16)
    ref_bf16 = fc3_reference(x, params, compute_dtype=jnp.bfloat16)
    np.testing.assert_allclose(np.asarray(out_bf16), np.asarray(ref_bf16),
                               rtol=2e-2, atol=2e-2)

    print("KERNEL_OK")
</pallas_src>

<mosaic_0001>
module attributes {stable_mosaic.version = 11 : i64} {
  func.func @_fc3_kernel(%arg0: i32, %arg1: memref<8x1536xf32, #tpu.memory_space<vmem>>, %arg2: memref<1536x128xf32, #tpu.memory_space<vmem>>, %arg3: memref<1x128xf32, #tpu.memory_space<vmem>>, %arg4: memref<1x128xf32, #tpu.memory_space<vmem>>, %arg5: memref<128x128xf32, #tpu.memory_space<vmem>>, %arg6: memref<1x128xf32, #tpu.memory_space<vmem>>, %arg7: memref<1x128xf32, #tpu.memory_space<vmem>>, %arg8: memref<128x128xf32, #tpu.memory_space<vmem>>, %arg9: memref<1x128xf32, #tpu.memory_space<vmem>>, %arg10: memref<8x128xf32, #tpu.memory_space<vmem>>, %arg11: memref<8x128xf32, #tpu.memory_space<vmem>>) attributes {dimension_semantics = [#tpu.dimension_semantics<arbitrary>], iteration_bounds = array<i64: 2>, scalar_prefetch = 0 : i64, scratch_operands = 1 : i64, tpu.core_type = #tpu.core_type<tc>, window_params = [{transform_indices = @transform_0, window_bounds = array<i64: 8, 1536>}, {transform_indices = @transform_1, window_bounds = array<i64: 1536, 128>}, {pipeline_mode = #tpu.pipeline_mode<synchronous>, transform_indices = @transform_2, window_bounds = array<i64: 1, 128>}, {pipeline_mode = #tpu.pipeline_mode<synchronous>, transform_indices = @transform_3, window_bounds = array<i64: 1, 128>}, {pipeline_mode = #tpu.pipeline_mode<synchronous>, transform_indices = @transform_4, window_bounds = array<i64: 128, 128>}, {pipeline_mode = #tpu.pipeline_mode<synchronous>, transform_indices = @transform_5, window_bounds = array<i64: 1, 128>}, {pipeline_mode = #tpu.pipeline_mode<synchronous>, transform_indices = @transform_6, window_bounds = array<i64: 1, 128>}, {pipeline_mode = #tpu.pipeline_mode<synchronous>, transform_indices = @transform_7, window_bounds = array<i64: 128, 128>}, {pipeline_mode = #tpu.pipeline_mode<synchronous>, transform_indices = @transform_8, window_bounds = array<i64: 1, 128>}, {pipeline_mode = #tpu.pipeline_mode<synchronous>, transform_indices = @transform_9, window_bounds = array<i64: 8, 128>}]} {
    %c0_i32 = arith.constant 0 : i32
    %0 = arith.cmpi eq, %arg0, %c0_i32 : i32
    %1 = arith.extui %0 : i1 to i32
    %c0_i32_0 = arith.constant 0 : i32
    %2 = arith.cmpi ne, %1, %c0_i32_0 : i32
    scf.if %2 {
      %cst_9 = arith.constant 0.000000e+00 : f32
      %12 = vector.broadcast %cst_9 : f32 to vector<8x128xf32>
      %c0_10 = arith.constant 0 : index
      %c0_11 = arith.constant 0 : index
      %13 = vector.load %arg11[%c0_10, %c0_11] : memref<8x128xf32, #tpu.memory_space<vmem>>, vector<8x128xf32>
      tpu.vector_store %arg11[%c0_10, %c0_11], %12 {strides = array<i32>} : memref<8x128xf32, #tpu.memory_space<vmem>>, vector<8x128xf32>,
    } else {
    }
    %c0 = arith.constant 0 : index
    %c0_1 = arith.constant 0 : index
    %3 = vector.load %arg11[%c0, %c0_1] : memref<8x128xf32, #tpu.memory_space<vmem>>, vector<8x128xf32>
    %c0_2 = arith.constant 0 : index
    %c0_3 = arith.constant 0 : index
    %4 = vector.load %arg1[%c0_2, %c0_3] : memref<8x1536xf32, #tpu.memory_space<vmem>>, vector<8x1536xf32>
    %c0_4 = arith.constant 0 : index
    %c0_5 = arith.constant 0 : index
    %5 = vector.load %arg2[%c0_4, %c0_5] : memref<1536x128xf32, #tpu.memory_space<vmem>>, vector<1536x128xf32>
    %cst = arith.constant dense<0.000000e+00> : vector<8x128xf32>
    %6 = tpu.matmul %4, %5, %cst {dimension_numbers = #tpu.dot_dimension_numbers<[1], [0], [0], [1], [0, 0, 1, 1], [], []>} : vector<8x1536xf32>, vector<1536x128xf32>, vector<8x128xf32> -> vector<8x128xf32>
    %7 = arith.addf %3, %6 : vector<8x128xf32>
    %c0_6 = arith.constant 0 : index
    %c0_7 = arith.constant 0 : index
    %8 = vector.load %arg11[%c0_6, %c0_7] : memref<8x128xf32, #tpu.memory_space<vmem>>, vector<8x128xf32>
    tpu.vector_store %arg11[%c0_6, %c0_7], %7 {strides = array<i32>} : memref<8x128xf32, #tpu.memory_space<vmem>>, vector<8x128xf32>,
    %c1_i32 = arith.constant 1 : i32
    %9 = arith.cmpi eq, %arg0, %c1_i32 : i32
    %10 = arith.extui %9 : i1 to i32
    %c0_i32_8 = arith.constant 0 : i32
    %11 = arith.cmpi ne, %10, %c0_i32_8 : i32
    scf.if %11 {
      %c0_9 = arith.constant 0 : index
      %c0_10 = arith.constant 0 : index
      %12 = vector.load %arg11[%c0_9, %c0_10] : memref<8x128xf32, #tpu.memory_space<vmem>>, vector<8x128xf32>
      %cst_11 = arith.constant dense<0.000000e+00> : vector<128xf32>
      %13 = vector.multi_reduction <add>, %12, %cst_11 [0] : vector<8x128xf32> to vector<128xf32>
      %14 = vector.shape_cast %13 : vector<128xf32> to vector<1x128xf32>
      %cst_12 = arith.constant 8.000000e+00 : f32
      %15 = vector.broadcast %cst_12 : f32 to vector<1x128xf32>
      %16 = arith.divf %14, %15 : vector<1x128xf32>
      %17 = arith.mulf %12, %12 : vector<8x128xf32>
      %cst_13 = arith.constant dense<0.000000e+00> : vector<128xf32>
      %18 = vector.multi_reduction <add>, %17, %cst_13 [0] : vector<8x128xf32> to vector<128xf32>
      %19 = vector.shape_cast %18 : vector<128xf32> to vector<1x128xf32>
      %cst_14 = arith.constant 8.000000e+00 : f32
      %20 = vector.broadcast %cst_14 : f32 to vector<1x128xf32>
      %21 = arith.divf %19, %20 : vector<1x128xf32>
      %22 = arith.mulf %16, %16 : vector<1x128xf32>
      %23 = arith.subf %21, %22 : vector<1x128xf32>
      %c0_15 = arith.constant 0 : index
      %c0_16 = arith.constant 0 : index
      %24 = vector.load %arg3[%c0_15, %c0_16] : memref<1x128xf32, #tpu.memory_space<vmem>>, vector<1x128xf32>
      %cst_17 = arith.constant 9.99999974E-6 : f32
      %25 = vector.broadcast %cst_17 : f32 to vector<1x128xf32>
      %26 = arith.addf %23, %25 : vector<1x128xf32>
      %27 = math.rsqrt %26 : vector<1x128xf32>
      %28 = arith.mulf %24, %27 : vector<1x128xf32>
      %c0_18 = arith.constant 0 : index
      %c0_19 = arith.constant 0 : index
      %29 = vector.load %arg4[%c0_18, %c0_19] : memref<1x128xf32, #tpu.memory_space<vmem>>, vector<1x128xf32>
      %30 = arith.mulf %16, %28 : vector<1x128xf32>
      %31 = arith.subf %29, %30 : vector<1x128xf32>
      %32 = vector.broadcast %28 : vector<1x128xf32> to vector<8x128xf32>
      %33 = arith.mulf %12, %32 : vector<8x128xf32>
      %34 = vector.broadcast %31 : vector<1x128xf32> to vector<8x128xf32>
      %35 = arith.addf %33, %34 : vector<8x128xf32>
      %cst_20 = arith.constant 0.000000e+00 : f32
      %36 = vector.broadcast %cst_20 : f32 to vector<8x128xf32>
      %37 = arith.maximumf %35, %36 : vector<8x128xf32>
      %c0_21 = arith.constant 0 : index
      %c0_22 = arith.constant 0 : index
      %38 = vector.load %arg5[%c0_21, %c0_22] : memref<128x128xf32, #tpu.memory_space<vmem>>, vector<128x128xf32>
      %cst_23 = arith.constant dense<0.000000e+00> : vector<8x128xf32>
      %39 = tpu.matmul %37, %38, %cst_23 {dimension_numbers = #tpu.dot_dimension_numbers<[1], [0], [0], [1], [0, 0, 1, 1], [], []>} : vector<8x128xf32>, vector<128x128xf32>, vector<8x128xf32> -> vector<8x128xf32>
      %cst_24 = arith.constant dense<0.000000e+00> : vector<128xf32>
      %40 = vector.multi_reduction <add>, %39, %cst_24 [0] : vector<8x128xf32> to vector<128xf32>
      %41 = vector.shape_cast %40 : vector<128xf32> to vector<1x128xf32>
      %cst_25 = arith.constant 8.000000e+00 : f32
      %42 = vector.broadcast %cst_25 : f32 to vector<1x128xf32>
      %43 = arith.divf %41, %42 : vector<1x128xf32>
      %44 = arith.mulf %39, %39 : vector<8x128xf32>
      %cst_26 = arith.constant dense<0.000000e+00> : vector<128xf32>
      %45 = vector.multi_reduction <add>, %44, %cst_26 [0] : vector<8x128xf32> to vector<128xf32>
      %46 = vector.shape_cast %45 : vector<128xf32> to vector<1x128xf32>
      %cst_27 = arith.constant 8.000000e+00 : f32
      %47 = vector.broadcast %cst_27 : f32 to vector<1x128xf32>
      %48 = arith.divf %46, %47 : vector<1x128xf32>
      %49 = arith.mulf %43, %43 : vector<1x128xf32>
      %50 = arith.subf %48, %49 : vector<1x128xf32>
      %c0_28 = arith.constant 0 : index
      %c0_29 = arith.constant 0 : index
      %51 = vector.load %arg6[%c0_28, %c0_29] : memref<1x128xf32, #tpu.memory_space<vmem>>, vector<1x128xf32>
      %cst_30 = arith.constant 9.99999974E-6 : f32
      %52 = vector.broadcast %cst_30 : f32 to vector<1x128xf32>
      %53 = arith.addf %50, %52 : vector<1x128xf32>
      %54 = math.rsqrt %53 : vector<1x128xf32>
      %55 = arith.mulf %51, %54 : vector<1x128xf32>
      %c0_31 = arith.constant 0 : index
      %c0_32 = arith.constant 0 : index
      %56 = vector.load %arg7[%c0_31, %c0_32] : memref<1x128xf32, #tpu.memory_space<vmem>>, vector<1x128xf32>
      %57 = arith.mulf %43, %55 : vector<1x128xf32>
      %58 = arith.subf %56, %57 : vector<1x128xf32>
      %59 = vector.broadcast %55 : vector<1x128xf32> to vector<8x128xf32>
      %60 = arith.mulf %39, %59 : vector<8x128xf32>
      %61 = vector.broadcast %58 : vector<1x128xf32> to vector<8x128xf32>
      %62 = arith.addf %60, %61 : vector<8x128xf32>
      %cst_33 = arith.constant 0.000000e+00 : f32
      %63 = vector.broadcast %cst_33 : f32 to vector<8x128xf32>
      %64 = arith.maximumf %62, %63 : vector<8x128xf32>
      %c0_34 = arith.constant 0 : index
      %c0_35 = arith.constant 0 : index
      %65 = vector.load %arg8[%c0_34, %c0_35] : memref<128x128xf32, #tpu.memory_space<vmem>>, vector<128x128xf32>
      %cst_36 = arith.constant dense<0.000000e+00> : vector<8x128xf32>
      %66 = tpu.matmul %64, %65, %cst_36 {dimension_numbers = #tpu.dot_dimension_numbers<[1], [0], [0], [1], [0, 0, 1, 1], [], []>} : vector<8x128xf32>, vector<128x128xf32>, vector<8x128xf32> -> vector<8x128xf32>
      %c0_37 = arith.constant 0 : index
      %c0_38 = arith.constant 0 : index
      %67 = vector.load %arg9[%c0_37, %c0_38] : memref<1x128xf32, #tpu.memory_space<vmem>>, vector<1x128xf32>
      %68 = vector.broadcast %67 : vector<1x128xf32> to vector<8x128xf32>
      %69 = arith.addf %66, %68 : vector<8x128xf32>
      %c0_39 = arith.constant 0 : index
      %c0_40 = arith.constant 0 : index
      %70 = vector.load %arg10[%c0_39, %c0_40] : memref<8x128xf32, #tpu.memory_space<vmem>>, vector<8x128xf32>
      tpu.vector_store %arg10[%c0_39, %c0_40], %69 {strides = array<i32>} : memref<8x128xf32, #tpu.memory_space<vmem>>, vector<8x128xf32>,
    } else {
    }
    return
  }
  func.func @transform_0(%arg0: i32) -> (i32, i32) {
    %c0_i32 = arith.constant 0 : i32
    %c0_i32_0 = arith.constant 0 : i32
    return %c0_i32, %arg0 : i32, i32
  }
  func.func @transform_1(%arg0: i32) -> (i32, i32) {
    %c0_i32 = arith.constant 0 : i32
    %c0_i32_0 = arith.constant 0 : i32
    return %arg0, %c0_i32 : i32, i32
  }
  func.func @transform_2(%arg0: i32) -> (i32, i32) {
    %c0_i32 = arith.constant 0 : i32
    %c0_i32_0 = arith.constant 0 : i32
    %c0_i32_1 = arith.constant 0 : i32
    return %c0_i32, %c0_i32_0 : i32, i32
  }
  func.func @transform_3(%arg0: i32) -> (i32, i32) {
    %c0_i32 = arith.constant 0 : i32
    %c0_i32_0 = arith.constant 0 : i32
    %c0_i32_1 = arith.constant 0 : i32
    return %c0_i32, %c0_i32_0 : i32, i32
  }
  func.func @transform_4(%arg0: i32) -> (i32, i32) {
    %c0_i32 = arith.constant 0 : i32
    %c0_i32_0 = arith.constant 0 : i32
    %c0_i32_1 = arith.constant 0 : i32
    return %c0_i32, %c0_i32_0 : i32, i32
  }
  func.func @transform_5(%arg0: i32) -> (i32, i32) {
    %c0_i32 = arith.constant 0 : i32
    %c0_i32_0 = arith.constant 0 : i32
    %c0_i32_1 = arith.constant 0 : i32
    return %c0_i32, %c0_i32_0 : i32, i32
  }
  func.func @transform_6(%arg0: i32) -> (i32, i32) {
    %c0_i32 = arith.constant 0 : i32
    %c0_i32_0 = arith.constant 0 : i32
    %c0_i32_1 = arith.constant 0 : i32
    return %c0_i32, %c0_i32_0 : i32, i32
  }
  func.func @transform_7(%arg0: i32) -> (i32, i32) {
    %c0_i32 = arith.constant 0 : i32
    %c0_i32_0 = arith.constant 0 : i32
    %c0_i32_1 = arith.constant 0 : i32
    return %c0_i32, %c0_i32_0 : i32, i32
  }
  func.func @transform_8(%arg0: i32) -> (i32, i32) {
    %c0_i32 = arith.constant 0 : i32
    %c0_i32_0 = arith.constant 0 : i32
    %c0_i32_1 = arith.constant 0 : i32
    return %c0_i32, %c0_i32_0 : i32, i32
  }
  func.func @transform_9(%arg0: i32) -> (i32, i32) {
    %c0_i32 = arith.constant 0 : i32
    %c0_i32_0 = arith.constant 0 : i32
    %c0_i32_1 = arith.constant 0 : i32
    return %c0_i32, %c0_i32_0 : i32, i32
  }
}

</mosaic_0001>

<bundles_post_ra>
// kernel: fc3_forward.1
= control target key start
LH: loop header
LB: loop body
LE: loop exit
PB: predicated region body
PF: predicated region fallthrough
CT: control target
= control target key end

     0   :  { %s3123_s0 = inlined_call_operand.vmem [shape: f32[8,3072], index: 0, kind: input, shape index: {}]   ;;  %s3124_s1 = inlined_call_operand.hbm [shape: f32[3072,128], index: 1, kind: input, shape index: {}]   ;;  %s3125_s2 = inlined_call_operand.hbm [shape: f32[1,128], index: 2, kind: input, shape index: {}]   ;;  %s3126_s3 = inlined_call_operand.hbm [shape: f32[1,128], index: 3, kind: input, shape index: {}]   ;;  %s3127_s4 = inlined_call_operand.hbm [shape: f32[128,128], index: 4, kind: input, shape index: {}]   ;;  %s3128_s5 = inlined_call_operand.hbm [shape: f32[1,128], index: 5, kind: input, shape index: {}]   ;;  %s3129_s6 = inlined_call_operand.hbm [shape: f32[1,128], index: 6, kind: input, shape index: {}]   ;;  %s3130_s7 = inlined_call_operand.hbm [shape: f32[128,128], index: 7, kind: input, shape index: {}]   ;;  %s3131_s8 = inlined_call_operand.hbm [shape: f32[1,128], index: 8, kind: input, shape index: {}]   ;;  %s3132_s9 = inlined_call_operand.hbm [shape: f32[8,128], index: 9, kind: output, shape index: {}]  }
   0x1   :  { %3139 = sst [smem:[#allocation24_spill]] %s3125_s2 }
   0x2   :  { %14 = vsyncpa [#allocation4], 0 }
   0x3   :  { %16 = vsyncpa [#allocation4 + $0x1], 0 }
   0x4   :  { %17 = vsyncpa [#allocation7], 0 }
   0x5   :  { %18 = vsyncpa [#allocation10], 0 }
   0x6   :  { %19 = vsyncpa [#allocation13], 0 }
   0x7   :  { %20 = vsyncpa [#allocation16], 0 }
   0x8   :  { %21 = vsyncpa [#allocation5], 0  ;;  %s2570_s30 = smov 0   ;;  %s2572_s10 = smov 0  }
   0x9   :  { %s2574_s11 = smov 0   ;;  %s2576_s12 = smov 0  }
   0xa LB: > { %s2505_s13 = smov [#allocation6]   ;;  %s2591_s15 = sadd.s32 4294967295, %s2503_s12   ;;  %s2503_s12 = sphi %s2576_s12, %s3162_s12   ;;  %s2499_s11 = sphi %s2574_s11, %s3161_s11   ;;  %s2495_s10 = sphi %s2572_s10, %s3160_s10   ;;  %s2491_s30 = sphi %s2570_s30, %s3159_s30  }
   0xb   : > { %s265_s14 = sshll.u32 %s2505_s13, 4  ;;  %p1487_p0 = scmp.ge.s32.totalorder %s2503_s12, 1  ;;  %s266_s14 = int_to_ptr.vmem [resolvable:$true] %s265_s14 }
   0xc   : > { %p3133_p1 = scmp.eq.s32.totalorder %s2591_s15, 0  ;;  %p252_p2 = scmp.lt.s32.totalorder %s2503_s12, 3 }
   0xd   : > { %s2506_s17 = smov [#allocation9]   ;;  %s2507_s20 = smov [#allocation12]  }
   0xe   : > { %p2597_p4 = pnand %p1487_p0, %p252_p2  ;;  %s286_s18 = sshll.u32 %s2506_s17, 4  ;;  %s2603_s18 = int_to_ptr.vmem [resolvable:$true] %s286_s18 }
   0xf   : > { %s311_s21 = sshll.u32 %s2507_s20, 4  ;;  %s3142_s2 = sld [smem:[#allocation24_spill]]  ;;  %s2611_s21 = int_to_ptr.vmem [resolvable:$true] %s311_s21 }
  0x10   : > { %s3140_s16 = scalar_select %p2597_p4, 1, 0 }
  0x11   : > { %p2104_p5 = pneg %p2597_p4 }
  0x13   : > { %p2607_p6 = pnand %p2104_p5, %p3133_p1 }
  0x15   : > { %s2197_s24 = scalar_lea.hbm %s3142_s2, 16  ;;  %p2621_p8 = pneg %p2607_p6 }
  0x16   : > { %p2198_p7 = scmp.ne.s32.totalorder %s3142_s2, %s2197_s24  ;;  %p2204_p11 = scmp.lt.u32.totalorder %s2197_s24, %s3142_s2 }
  0x18   : > { %p2200_p9 = pnand %p2621_p8, %p2198_p7 }
  0x1a   : > { %p2201_p10 = pneg %p2200_p9 }
  0x1c   : > { %p2206_p12 = pnand %p2204_p11, %p2201_p10 }
  0x1e   : > { %2209 = shalt.err (!%p2206_p12)
}
  0x1f   : > { %s2210_s13 = scalar_lea.vmem %s266_s14, 16  ;;  %s2217_s17 = scalar_lea.vmem %s266_s14, 32 }
  0x20   : > { %p2211_p13 = scmp.ne.s32.totalorder %s266_s14, %s2210_s13  ;;  %p2218_p5 = scmp.lt.s32.totalorder %s266_s14, %s266_s14 }
  0x21   : > { %p2219_p3 = scmp.lt.s32.totalorder %s2217_s17, %s2210_s13 }
  0x22   : > { %p2213_p0 = pnand %p2211_p13, %p2621_p8 }
  0x23   : > { %p2220_p1 = por %p2219_p3, %p2218_p5 }
  0x24   : > { %p2214_p2 = pneg %p2213_p0 }
  0x26   : > { %p2221_p4 = pnand %p2220_p1, %p2214_p2 }
  0x28   : > { %2224 = shalt.err (!%p2221_p4)
}
  0x29   : > { %2107 = dma.hbm_to_vmem [thread:$0]  (!%p2607_p6), %s3142_s2, 16, %s266_s14, [#allocation7]  }
  0x2a   : > { %s2225_s25 = scalar_lea.hbm %s3127_s4, 2048 }
  0x2b   : > { %p2226_p7 = scmp.ne.s32.totalorder %s3127_s4, %s2225_s25  ;;  %p2232_p1 = scmp.lt.u32.totalorder %s2225_s25, %s3127_s4 }
  0x2d   : > { %p2228_p9 = pnand %p2226_p7, %p2621_p8 }
  0x2f   : > { %p2229_p3 = pneg %p2228_p9 }
  0x31   : > { %p2234_p4 = pnand %p2232_p1, %p2229_p3 }
  0x33   : > { %2237 = shalt.err (!%p2234_p4)
}
  0x34   : > { %s2238_s14 = scalar_lea.vmem %s2603_s18, 2048  ;;  %p2246_p13 = scmp.lt.s32.totalorder %s2603_s18, %s2603_s18 }
  0x35   : > { %p2239_p10 = scmp.ne.s32.totalorder %s2603_s18, %s2238_s14  ;;  %p2247_p0 = scmp.lt.s32.totalorder %s2238_s14, %s2238_s14 }
  0x37   : > { %p2241_p11 = pnand %p2239_p10, %p2621_p8  ;;  %p2248_p2 = por %p2247_p0, %p2246_p13 }
  0x39   : > { %p2242_p12 = pneg %p2241_p11 }
  0x3b   : > { %p2249_p5 = pnand %p2248_p2, %p2242_p12 }
  0x3d   : > { %2252 = shalt.err (!%p2249_p5)
}
  0x3e   : > { %s3135_s17 = smov 128   ;;  %s3137_s20 = smov 8  }
  0x3f   : > { %2113 = dma.hbm_to_vmem [thread:$0]  (!%p2607_p6), %s3127_s4, 2048, %s2603_s18, [#allocation10], %s3135_s17, %s3135_s17, %s3137_s20  }
  0x40   : > { %s2253_s26 = scalar_lea.hbm %s3129_s6, 16 }
  0x41   : > { %p2254_p7 = scmp.ne.s32.totalorder %s3129_s6, %s2253_s26  ;;  %p2260_p1 = scmp.lt.u32.totalorder %s2253_s26, %s3129_s6 }
  0x43   : > { %p2256_p9 = pnand %p2254_p7, %p2621_p8 }
  0x45   : > { %p2257_p3 = pneg %p2256_p9 }
  0x47   : > { %p2262_p4 = pnand %p2260_p1, %p2257_p3 }
  0x49   : > { %2265 = shalt.err (!%p2262_p4)
}
  0x4a   : > { %s2266_s18 = scalar_lea.vmem %s2611_s21, 16  ;;  %s2273_s22 = scalar_lea.vmem %s2611_s21, 32 }
  0x4b   : > { %p2267_p10 = scmp.ne.s32.totalorder %s2611_s21, %s2266_s18  ;;  %p2274_p13 = scmp.lt.s32.totalorder %s2611_s21, %s2611_s21 }
  0x4c   : > { %p2275_p0 = scmp.lt.s32.totalorder %s2273_s22, %s2266_s18 }
  0x4d   : > { %p2269_p11 = pnand %p2267_p10, %p2621_p8 }
  0x4e   : > { %p2276_p2 = por %p2275_p0, %p2274_p13 }
  0x4f   : > { %p2270_p12 = pneg %p2269_p11 }
  0x51   : > { %p2277_p5 = pnand %p2276_p2, %p2270_p12 }
  0x53   : > { %2280 = shalt.err (!%p2277_p5)
}
  0x54   : > { %2119 = dma.hbm_to_vmem [thread:$0]  (!%p2607_p6), %s3129_s6, 16, %s2611_s21, [#allocation13]  }
  0x55   : > { %s2510_s25 = smov [#allocation8]   ;;  %s2511_s28 = smov [#allocation11]  }
  0x56   : > { %s276_s26 = sshll.u32 %s2510_s25, 4  ;;  %s300_s29 = sshll.u32 %s2511_s28, 4  ;;  %s277_s26 = int_to_ptr.vmem [resolvable:$true] %s276_s26  ;;  %s301_s29 = int_to_ptr.vmem [resolvable:$true] %s300_s29 }
  0x57   : > { %s2281_s18 = scalar_lea.hbm %s3126_s3, 16 }
  0x58   : > { %p2282_p7 = scmp.ne.s32.totalorder %s3126_s3, %s2281_s18  ;;  %p2288_p1 = scmp.lt.u32.totalorder %s2281_s18, %s3126_s3 }
  0x5a   : > { %p2284_p9 = pnand %p2282_p7, %p2621_p8 }
  0x5c   : > { %p2285_p3 = pneg %p2284_p9 }
  0x5e   : > { %p2290_p4 = pnand %p2288_p1, %p2285_p3 }
  0x60   : > { %2293 = shalt.err (!%p2290_p4)
}
  0x61   : > { %s2294_s21 = scalar_lea.vmem %s277_s26, 16  ;;  %s2301_s24 = scalar_lea.vmem %s277_s26, 32 }
  0x62   : > { %p2295_p10 = scmp.ne.s32.totalorder %s277_s26, %s2294_s21  ;;  %p2302_p13 = scmp.lt.s32.totalorder %s277_s26, %s277_s26 }
  0x63   : > { %p2303_p0 = scmp.lt.s32.totalorder %s2301_s24, %s2294_s21 }
  0x64   : > { %p2297_p11 = pnand %p2295_p10, %p2621_p8 }
  0x65   : > { %p2304_p2 = por %p2303_p0, %p2302_p13 }
  0x66   : > { %p2298_p12 = pneg %p2297_p11 }
  0x68   : > { %p2305_p5 = pnand %p2304_p2, %p2298_p12 }
  0x6a   : > { %2308 = shalt.err (!%p2305_p5)
}
  0x6b   : > { %2110 = dma.hbm_to_vmem [thread:$0]  (!%p2607_p6), %s3126_s3, 16, %s277_s26, [#allocation7]  }
  0x6c   : > { %s2309_s13 = scalar_lea.hbm %s3128_s5, 16 }
  0x6d   : > { %p2310_p7 = scmp.ne.s32.totalorder %s3128_s5, %s2309_s13  ;;  %p2316_p1 = scmp.lt.u32.totalorder %s2309_s13, %s3128_s5 }
  0x6f   : > { %p2312_p9 = pnand %p2310_p7, %p2621_p8 }
  0x71   : > { %p2313_p3 = pneg %p2312_p9 }
  0x73   : > { %p2318_p4 = pnand %p2316_p1, %p2313_p3 }
  0x75   : > { %2321 = shalt.err (!%p2318_p4)
}
  0x76   : > { %s2322_s21 = scalar_lea.vmem %s301_s29, 16  ;;  %s2329_s26 = scalar_lea.vmem %s301_s29, 32 }
  0x77   : > { %p2323_p10 = scmp.ne.s32.totalorder %s301_s29, %s2322_s21  ;;  %p2330_p13 = scmp.lt.s32.totalorder %s301_s29, %s301_s29 }
  0x78   : > { %p2331_p0 = scmp.lt.s32.totalorder %s2329_s26, %s2322_s21 }
  0x79   : > { %p2325_p11 = pnand %p2323_p10, %p2621_p8 }
  0x7a   : > { %p2332_p2 = por %p2331_p0, %p2330_p13 }
  0x7b   : > { %p2326_p12 = pneg %p2325_p11 }
  0x7d   : > { %p2333_p5 = pnand %p2332_p2, %p2326_p12 }
  0x7f   : > { %2336 = shalt.err (!%p2333_p5)
}
  0x80   : > { %2116 = dma.hbm_to_vmem [thread:$0]  (!%p2607_p6), %s3128_s5, 16, %s301_s29, [#allocation10]  }
  0x81   : > { %s2512_s25 = smov [#allocation14]   ;;  %s2513_s28 = smov [#allocation15]  }
  0x82   : > { %s321_s20 = sshll.u32 %s2512_s25, 4  ;;  %s335_s13 = sshll.u32 %s2513_s28, 4  ;;  %s322_s20 = int_to_ptr.vmem [resolvable:$true] %s321_s20  ;;  %s336_s13 = int_to_ptr.vmem [resolvable:$true] %s335_s13 }
  0x83   : > { %s2337_s22 = scalar_lea.hbm %s3130_s7, 2048 }
  0x84   : > { %p2338_p7 = scmp.ne.s32.totalorder %s3130_s7, %s2337_s22  ;;  %p2344_p1 = scmp.lt.u32.totalorder %s2337_s22, %s3130_s7 }
  0x86   : > { %p2340_p9 = pnand %p2338_p7, %p2621_p8 }
  0x88   : > { %p2341_p3 = pneg %p2340_p9 }
  0x8a   : > { %p2346_p4 = pnand %p2344_p1, %p2341_p3 }
  0x8c   : > { %2349 = shalt.err (!%p2346_p4)
}
  0x8d   : > { %s2350_s29 = scalar_lea.vmem %s322_s20, 2048  ;;  %p2358_p13 = scmp.lt.s32.totalorder %s322_s20, %s322_s20 }
  0x8e   : > { %p2351_p10 = scmp.ne.s32.totalorder %s322_s20, %s2350_s29  ;;  %p2359_p0 = scmp.lt.s32.totalorder %s2350_s29, %s2350_s29 }
  0x90   : > { %p2353_p11 = pnand %p2351_p10, %p2621_p8  ;;  %p2360_p2 = por %p2359_p0, %p2358_p13 }
  0x92   : > { %p2354_p12 = pneg %p2353_p11 }
  0x94   : > { %p2361_p5 = pnand %p2360_p2, %p2354_p12 }
  0x96   : > { %2364 = shalt.err (!%p2361_p5)
}
  0x97   : > { %s3144_s17 = smov 8   ;;  %s3145_s25 = smov 128  }
  0x98   : > { %2122 = dma.hbm_to_vmem [thread:$0]  (!%p2607_p6), %s3130_s7, 2048, %s322_s20, [#allocation13], %s3145_s25, %s3145_s25, %s3144_s17  }
  0x99   : > { %s2365_s23 = scalar_lea.hbm %s3131_s8, 16 }
  0x9a   : > { %p2366_p7 = scmp.ne.s32.totalorder %s3131_s8, %s2365_s23  ;;  %p2372_p1 = scmp.lt.u32.totalorder %s2365_s23, %s3131_s8 }
  0x9c   : > { %p2368_p9 = pnand %p2366_p7, %p2621_p8 }
  0x9e   : > { %p2369_p3 = pneg %p2368_p9 }
  0xa0   : > { %p2374_p4 = pnand %p2372_p1, %p2369_p3 }
  0xa2   : > { %2377 = shalt.err (!%p2374_p4)
}
  0xa3   : > { %s2378_s28 = scalar_lea.vmem %s336_s13, 16  ;;  %s2385_s20 = scalar_lea.vmem %s336_s13, 32 }
  0xa4   : > { %p2379_p10 = scmp.ne.s32.totalorder %s336_s13, %s2378_s28  ;;  %p2386_p13 = scmp.lt.s32.totalorder %s336_s13, %s336_s13 }
  0xa5   : > { %p2387_p0 = scmp.lt.s32.totalorder %s2385_s20, %s2378_s28 }
  0xa6   : > { %p2381_p11 = pnand %p2379_p10, %p2621_p8 }
  0xa7   : > { %p2388_p2 = por %p2387_p0, %p2386_p13 }
  0xa8   : > { %p2382_p12 = pneg %p2381_p11 }
  0xaa   : > { %p2389_p5 = pnand %p2388_p2, %p2382_p12 }
  0xac   : > { %2392 = shalt.err (!%p2389_p5)
}
  0xad   : > { %2125 = dma.hbm_to_vmem [thread:$0]  (!%p2607_p6), %s3131_s8, 16, %s336_s13, [#allocation16]  }
  0xae   : > { %s2763_s27 = sadd.s32 1, %s2503_s12   ;;  %s60_s22 = sadd.s32 1, %s2499_s11 }
  0xaf   : > { %s57_s19 = ssub.s32 %s2503_s12, %s2763_s27  ;;  %p67_p7 = scmp.ne.s32.totalorder %s2499_s11, %s2495_s10 }
  0xb0   : > { %p58_p8 = scmp.eq.s32.totalorder %s57_s19, 0  ;;  %p68_p9 = scmp.eq.s32.totalorder %s2503_s12, 0 }
  0xb1   : > { %p73_p3 = scmp.ne.s32.totalorder %s2495_s10, %s2491_s30  ;;  %p3146_p4 = scmp.eq.s32.totalorder %s2591_s15, 0 }
  0xb2   : > { %s2774_s23 = scalar_select %p58_p8, %s2499_s11, %s60_s22  }
  0xb3   : > { %p69_p1 = por %p68_p9, %p67_p7  ;;  %p2778_p10 = por %p3146_p4, %p73_p3 }
  0xb4   : > { %p2137_p11 = scmp.lt.s32.totalorder %s2503_s12, 2  ;;  %s355_s26 = sand.u32 1, %s2499_s11  }
  0xb5   : > { %s2068_s13 = smul.u32 1536, %s355_s26  ;;  %s2398_s28 = scalar_lea.hbm %s3124_s1, 49152 }
  0xb6   : > { %s1513_s24 = smul.u32 24576, %s2503_s12  ;;  %p2785_p6 = pnand %p2137_p11, %p69_p1 }
  0xb7   : > { %s359_s14 = scalar_lea.vmem [#allocation3], %s2068_s13  ;;  %s2796_s12 = scalar_lea.sflag [#allocation4], %s355_s26 }
  0xb8   : > { %s2792_s30 = scalar_lea.hbm %s3124_s1, %s1513_s24  ;;  %s366_s18 = sshll.u32 %s359_s14, 4  ;;  %s2794_s18 = int_to_ptr.vmem [resolvable:$true] %s366_s18 }
  0xb9   : > { %s2393_s19 = scalar_lea.hbm %s2792_s30, 24576  ;;  %p2395_p13 = pneg %p2785_p6 }
  0xba   : > { %p2394_p12 = scmp.ne.s32.totalorder %s2792_s30, %s2393_s19  ;;  %p2399_p5 = scmp.lt.u32.totalorder %s2792_s30, %s3124_s1 }
  0xbb   : > { %p2400_p8 = scmp.lt.u32.totalorder %s2398_s28, %s2393_s19  ;;  %p2402_p9 = scmp.lt.u32.totalorder %s2393_s19, %s2792_s30 }
  0xbc   : > { %p2396_p0 = pnand %p2395_p13, %p2394_p12 }
  0xbd   : > { %p2401_p7 = por %p2400_p8, %p2399_p5 }
  0xbe   : > { %p2397_p2 = pneg %p2396_p0 }
  0xbf   : > { %p2403_p3 = por %p2402_p9, %p2401_p7 }
  0xc1   : > { %p2404_p1 = pnand %p2403_p3, %p2397_p2 }
  0xc3   : > { %2407 = shalt.err (!%p2404_p1)
}
  0xc4   : > { %s2408_s26 = scalar_lea.vmem %s2794_s18, 24576  ;;  %s2514_s13 = smov [#allocation3]  }
  0xc5   : > { %p2409_p4 = scmp.ne.s32.totalorder %s2794_s18, %s2408_s26  ;;  %s2413_s14 = sshll.u32 %s2514_s13, 4  ;;  %s2414_s14 = int_to_ptr.vmem [resolvable:$false] %s2413_s14 }
  0xc6   : > { %s2415_s2 = scalar_lea.vmem %s2414_s14, 49152  ;;  %p2416_p0 = scmp.lt.s32.totalorder %s2794_s18, %s2414_s14 }
  0xc7   : > { %p2411_p11 = pnand %p2409_p4, %p2395_p13  ;;  %p2417_p5 = scmp.lt.s32.totalorder %s2415_s2, %s2408_s26 }
  0xc9   : > { %p2412_p12 = pneg %p2411_p11  ;;  %p2418_p8 = por %p2417_p5, %p2416_p0 }
  0xcb   : > { %p2419_p7 = pnand %p2418_p8, %p2412_p12 }
  0xcd   : > { %2422 = shalt.err (!%p2419_p7)
}
  0xce   : > { %2129 = dma.hbm_to_vmem [thread:$0]  (!%p2785_p6), %s2792_s30, 24576, %s2794_s18, %s2796_s12, %s3145_s25, %s3145_s25, %s3144_s17  }
  0xcf   : > { %p3149_p13 = scmp.ne.s32.totalorder %s3140_s16, 0 }
  0xd0   : > { %s380_s19 = sand.u32 (!%p3149_p13), 1, %s2495_s10  }
  0xd1   : > { %378 = sbr.rel (%p3149_p13) target bundleno = 1105 (0x451), region = 56  ;;  %s381_s24 = scalar_lea.sflag (!%p3149_p13), [#allocation4], %s380_s19 }
  0xd2   : > { %s2069_s22 = smul.u32 (!%p3149_p13), 1536, %s380_s19 }
  0xd4   : > { %s2830_s28 = scalar_lea.vmem (!%p3149_p13), [#allocation3], %s2069_s22 }
  0xd8   : > { %2466 = dma.done.wait (%p2778_p10), %s381_s24, 24576  }
  0xd9   : > { %2468 = vsyncadd (%p2778_p10), %s381_s24, 4294942720  ;;  %p3150_p2 = scmp.eq.s32.totalorder %s2591_s15, 0 }
  0xdb   : > { %2470 = dma.done.wait (%p3150_p2), [#allocation7], 32   ;;  %p3151_p6 = pmov %p3150_p2 }
  0xdc   : > { %p3152_p9 = pmov %p3150_p2 }
  0xdd   : > { %2472 = vsyncadd (%p3151_p6), [#allocation7], 4294967264 }
  0xde   : > { %2474 = dma.done.wait (%p3152_p9), [#allocation10], 2064   ;;  %p3153_p3 = pmov %p3150_p2 }
  0xdf   : > { %p3154_p1 = pmov %p3150_p2 }
  0xe0   : > { %2476 = vsyncadd (%p3153_p3), [#allocation10], 4294965232 }
  0xe1   : > { %2478 = dma.done.wait (%p3154_p1), [#allocation13], 2064   ;;  %p3155_p4 = pmov %p3154_p1 }
  0xe2   : > { %p3156_p10 = pmov %p3154_p1 }
  0xe3   : > { %2480 = vsyncadd (%p3155_p4), [#allocation13], 4294965232 }
  0xe4   : > { %2482 = dma.done.wait (%p3156_p10), [#allocation16], 16   ;;  %p3157_p11 = pmov %p3154_p1 }
  0xe5   : > { %s447_s16 = smul.u32 12, %s2591_s15  ;;  %p3158_p0 = scmp.ne.s32.totalorder %s2591_s15, 0 }
  0xe6   : > { %2484 = vsyncadd (%p3157_p11), [#allocation16], 4294967280  ;;  %v2515_v0 = vmov (!%p3158_p0), 0.0  }
  0xe7   : > { %p448_p12 = scmp.lt.s32.totalorder %s447_s16, 23  ;;  %457 = sbr.rel (%p3158_p0) target bundleno = 238 (0xee), region = 92  ;;  %458 = vst [vmem:[#allocation2] sm:$0xff] (!%p3158_p0), %v2515_v0 }
  0xe9   : > { %s3164_s16 = smov (!%p448_p12, %s447_s16), 23 }
  0xea   : > { %s1505_s17 = sshll.u32 %s3164_s16, 3 }
  0xeb   : > { %s2856_s29 = scalar_lea.vmem %s3123_s0, %s1505_s17 }
  0xee PF: > { %v488_v1 = vld [vmem:[%s2830_s28 + $0x80] sm:$0xff]  ;;  %v489_v2 = vld [vmem:[%s2830_s28 + $0x88] sm:$0xff]  ;;  %v490_v12 = vld [vmem:[%s2830_s28 + $0x90] sm:$0xff]  ;;  %p1507_p5 = scmp.ne.s32.totalorder %s2591_s15, 1 }
  0xef   : > { %v520_v3 = vld [vmem:[%s2830_s28 + $0x180] sm:$0xff]  ;;  %v1828_v4 = vpack.c.bf16 %v489_v2, %v488_v1  ;;  %v521_v5 = vld [vmem:[%s2830_s28 + $0x188] sm:$0xff]  ;;  %v491_v14 = vld [vmem:[%s2830_s28 + $0x98] sm:$0xff]  ;;  %vm2517_vm0 = vmmov (!%p1507_p5), 0  }
  0xf0   : > { %v472_v6 = vld [vmem:[%s2830_s28] sm:$0xff]  ;;  %v473_v7 = vld [vmem:[%s2830_s28 + $0x8] sm:$0xff]  ;;  %v1860_v8 = vpack.c.bf16 %v521_v5, %v520_v3  ;;  %v522_v15 = vld [vmem:[%s2830_s28 + $0x190] sm:$0xff]  ;;  %v1832_v17 = vpack.c.bf16 %v491_v14, %v490_v12 }
  0xf1   : > { %v1830_v9 = vpack.c.bf16 %v473_v7, %v472_v6  ;;  %v504_v10 = vld [vmem:[%s2830_s28 + $0x100] sm:$0xff]  ;;  %v505_v11 = vld [vmem:[%s2830_s28 + $0x108] sm:$0xff]  ;;  %1829 = vmatprep.subr.bf16.mxu0 %v1828_v4  ;;  %v523_v16 = vld [vmem:[%s2830_s28 + $0x198] sm:$0xff] }
  0xf2   : > { %v1862_v13 = vpack.c.bf16 %v505_v11, %v504_v10  ;;  %1861 = vmatprep.subr.bf16.mxu1 %v1860_v8  ;;  %v1864_v18 = vpack.c.bf16 %v523_v16, %v522_v15  ;;  %v474_v19 = vld [vmem:[%s2830_s28 + $0x10] sm:$0xff]  ;;  %v475_v20 = vld [vmem:[%s2830_s28 + $0x18] sm:$0xff]  ;;  %v492_v24 = vld [vmem:[%s2830_s28 + $0xa0] sm:$0xff] }
  0xf3   : > { %1831 = vmatpush3.bf16.msra.mxu0 %v1830_v9  ;;  %v506_v21 = vld [vmem:[%s2830_s28 + $0x110] sm:$0xff]  ;;  %v1834_v22 = vpack.c.bf16 %v475_v20, %v474_v19  ;;  %v507_v23 = vld [vmem:[%s2830_s28 + $0x118] sm:$0xff]  ;;  %v493_v25 = vld [vmem:[%s2830_s28 + $0xa8] sm:$0xff] }
  0xf4   : > { %1863 = vmatpush3.bf16.msra.mxu1 %v1862_v13  ;;  %1833 = vmatprep.subr.bf16.mxu0 %v1832_v17  ;;  %v1866_v26 = vpack.c.bf16 %v507_v23, %v506_v21  ;;  %v1836_v27 = vpack.c.bf16 %v493_v25, %v492_v24  ;;  %v524_v28 = vld [vmem:[%s2830_s28 + $0x1a0] sm:$0xff]  ;;  %v525_v29 = vld [vmem:[%s2830_s28 + $0x1a8] sm:$0xff]  ;;  %v494_v36 = vld [vmem:[%s2830_s28 + $0xb0] sm:$0xff] }
  0xf5   : > { %1865 = vmatprep.subr.bf16.mxu1 %v1864_v18  ;;  %v476_v30 = vld [vmem:[%s2830_s28 + $0x20] sm:$0xff]  ;;  %v1868_v31 = vpack.c.bf16 %v525_v29, %v524_v28  ;;  %v477_v32 = vld [vmem:[%s2830_s28 + $0x28] sm:$0xff]  ;;  %v495_v37 = vld [vmem:[%s2830_s28 + $0xb8] sm:$0xff] }
  0xf6   : > { %v508_v33 = vld [vmem:[%s2830_s28 + $0x120] sm:$0xff]  ;;  %v509_v34 = vld [vmem:[%s2830_s28 + $0x128] sm:$0xff]  ;;  %v1838_v35 = vpack.c.bf16 %v477_v32, %v476_v30  ;;  %v526_v38 = vld [vmem:[%s2830_s28 + $0x1b0] sm:$0xff]  ;;  %v1840_v40 = vpack.c.bf16 %v495_v37, %v494_v36 }
  0xf7   : > { %1835 = vmatpush3.bf16.msra.mxu0 %v1834_v22  ;;  %v1870_v39 = vpack.c.bf16 %v509_v34, %v508_v33  ;;  %v527_v41 = vld [vmem:[%s2830_s28 + $0x1b8] sm:$0xff]  ;;  %v478_v42 = vld [vmem:[%s2830_s28 + $0x30] sm:$0xff]  ;;  %v496_v47 = vld [vmem:[%s2830_s28 + $0xc0] sm:$0xff] }
  0xf8   : > { %1867 = vmatpush3.bf16.msra.mxu1 %v1866_v26  ;;  %1837 = vmatprep.subr.bf16.mxu0 %v1836_v27  ;;  %v479_v43 = vld [vmem:[%s2830_s28 + $0x38] sm:$0xff]  ;;  %v1872_v44 = vpack.c.bf16 %v527_v41, %v526_v38  ;;  %v510_v45 = vld [vmem:[%s2830_s28 + $0x130] sm:$0xff]  ;;  %v497_v48 = vld [vmem:[%s2830_s28 + $0xc8] sm:$0xff] }
  0xf9   : > { %1869 = vmatprep.subr.bf16.mxu1 %v1868_v31  ;;  %v511_v46 = vld [vmem:[%s2830_s28 + $0x138] sm:$0xff]  ;;  %v528_v49 = vld [vmem:[%s2830_s28 + $0x1c0] sm:$0xff]  ;;  %v529_v50 = vld [vmem:[%s2830_s28 + $0x1c8] sm:$0xff]  ;;  %v1842_v51 = vpack.c.bf16 %v479_v43, %v478_v42  ;;  %v1844_v53 = vpack.c.bf16 %v497_v48, %v496_v47 }
  0xfa   : > { %v1874_v52 = vpack.c.bf16 %v511_v46, %v510_v45  ;;  %v480_v54 = vld [vmem:[%s2830_s28 + $0x40] sm:$0xff]  ;;  %v481_v55 = vld [vmem:[%s2830_s28 + $0x48] sm:$0xff]  ;;  %v1876_v57 = vpack.c.bf16 %v529_v50, %v528_v49  ;;  %v498_v59 = vld [vmem:[%s2830_s28 + $0xd0] sm:$0xff] }
  0xfb   : > { %1839 = vmatpush3.bf16.msra.mxu0 %v1838_v35  ;;  %v512_v56 = vld [vmem:[%s2830_s28 + $0x140] sm:$0xff]  ;;  %v513_v58 = vld [vmem:[%s2830_s28 + $0x148] sm:$0xff]  ;;  %v499_v60 = vld [vmem:[%s2830_s28 + $0xd8] sm:$0xff]  ;;  %v1846_v63 = vpack.c.bf16 %v481_v55, %v480_v54 }
  0xfc   : > { %1871 = vmatpush3.bf16.msra.mxu1 %v1870_v39  ;;  %1841 = vmatprep.subr.bf16.mxu0 %v1840_v40  ;;  %v530_v61 = vld [vmem:[%s2830_s28 + $0x1d0] sm:$0xff]  ;;  %v531_v62 = vld [vmem:[%s2830_s28 + $0x1d8] sm:$0xff]  ;;  %v1878_v0 = vpack.c.bf16 %v513_v58, %v512_v56  ;;  %v1848_v1 = vpack.c.bf16 %v499_v60, %v498_v59  ;;  %v500_v7 = vld [vmem:[%s2830_s28 + $0xe0] sm:$0xff] }
  0xfd   : > { %1873 = vmatprep.subr.bf16.mxu1 %v1872_v44  ;;  %v482_v2 = vld [vmem:[%s2830_s28 + $0x50] sm:$0xff]  ;;  %v483_v3 = vld [vmem:[%s2830_s28 + $0x58] sm:$0xff]  ;;  %v1880_v5 = vpack.c.bf16 %v531_v62, %v530_v61  ;;  %v501_v8 = vld [vmem:[%s2830_s28 + $0xe8] sm:$0xff] }
  0xfe   : > { %v514_v4 = vld [vmem:[%s2830_s28 + $0x150] sm:$0xff]  ;;  %v515_v6 = vld [vmem:[%s2830_s28 + $0x158] sm:$0xff]  ;;  %v532_v9 = vld [vmem:[%s2830_s28 + $0x1e0] sm:$0xff]  ;;  %v1850_v11 = vpack.c.bf16 %v483_v3, %v482_v2  ;;  %v1852_v15 = vpack.c.bf16 %v501_v8, %v500_v7 }
  0xff   : > { %1843 = vmatpush3.bf16.msra.mxu0 %v1842_v51  ;;  %v533_v10 = vld [vmem:[%s2830_s28 + $0x1e8] sm:$0xff]  ;;  %v484_v12 = vld [vmem:[%s2830_s28 + $0x60] sm:$0xff]  ;;  %v1882_v14 = vpack.c.bf16 %v515_v6, %v514_v4  ;;  %v463_v18 = vld [vmem:[%s2856_s29 + $0x18] sm:$0xff] }
 0x100   : > { %1875 = vmatpush3.bf16.msra.mxu1 %v1874_v52  ;;  %1845 = vmatprep.subr.bf16.mxu0 %v1844_v53  ;;  %v485_v13 = vld [vmem:[%s2830_s28 + $0x68] sm:$0xff]  ;;  %v516_v16 = vld [vmem:[%s2830_s28 + $0x160] sm:$0xff]  ;;  %v1884_v19 = vpack.c.bf16 %v533_v10, %v532_v9  ;;  %v502_v21 = vld [vmem:[%s2830_s28 + $0xf0] sm:$0xff] }
 0x101   : > { %1877 = vmatprep.subr.bf16.mxu1 %v1876_v57  ;;  %v461_v17 = vld [vmem:[%s2856_s29 + $0x8] sm:$0xff]  ;;  %v517_v20 = vld [vmem:[%s2830_s28 + $0x168] sm:$0xff]  ;;  %v503_v22 = vld [vmem:[%s2830_s28 + $0xf8] sm:$0xff]  ;;  %798 = vmatprep.mubr.f32.mxu1 %v463_v18  ;;  %v1854_v25 = vpack.c.bf16 %v485_v13, %v484_v12 }
 0x102   : > { %728 = vmatprep.mubr.f32.mxu0 %v461_v17  ;;  %v534_v23 = vld [vmem:[%s2830_s28 + $0x1f0] sm:$0xff]  ;;  %v535_v24 = vld [vmem:[%s2830_s28 + $0x1f8] sm:$0xff]  ;;  %v1886_v26 = vpack.c.bf16 %v517_v20, %v516_v16  ;;  %v1856_v27 = vpack.c.bf16 %v503_v22, %v502_v21  ;;  %v552_v33 = vld [vmem:[%s2830_s28 + $0x280] sm:$0xff] }
 0x103   : > { %1847 = vmatpush3.bf16.msra.mxu0 %v1846_v63  ;;  %v486_v28 = vld [vmem:[%s2830_s28 + $0x70] sm:$0xff]  ;;  %v487_v29 = vld [vmem:[%s2830_s28 + $0x78] sm:$0xff]  ;;  %v1888_v31 = vpack.c.bf16 %v535_v24, %v534_v23  ;;  %v553_v34 = vld [vmem:[%s2830_s28 + $0x288] sm:$0xff] }
 0x104   : > { %1879 = vmatpush3.bf16.msra.mxu1 %v1878_v0  ;;  %1849 = vmatprep.subr.bf16.mxu0 %v1848_v1  ;;  %v518_v30 = vld [vmem:[%s2830_s28 + $0x170] sm:$0xff]  ;;  %v519_v32 = vld [vmem:[%s2830_s28 + $0x178] sm:$0xff]  ;;  %v584_v35 = vld [vmem:[%s2830_s28 + $0x380] sm:$0xff]  ;;  %v1858_v37 = vpack.c.bf16 %v487_v29, %v486_v28  ;;  %v1892_v39 = vpack.c.bf16 %v553_v34, %v552_v33 }
 0x105   : > { %1881 = vmatprep.subr.bf16.mxu1 %v1880_v5  ;;  %v585_v36 = vld [vmem:[%s2830_s28 + $0x388] sm:$0xff]  ;;  %v1890_v38 = vpack.c.bf16 %v519_v32, %v518_v30  ;;  %v536_v40 = vld [vmem:[%s2830_s28 + $0x200] sm:$0xff]  ;;  %v554_v45 = vld [vmem:[%s2830_s28 + $0x290] sm:$0xff] }
 0x106   : > { %v537_v41 = vld [vmem:[%s2830_s28 + $0x208] sm:$0xff]  ;;  %v568_v42 = vld [vmem:[%s2830_s28 + $0x300] sm:$0xff]  ;;  %v1924_v43 = vpack.c.bf16 %v585_v36, %v584_v35  ;;  %v555_v46 = vld [vmem:[%s2830_s28 + $0x298] sm:$0xff] }
 0x107   : > { %1851 = vmatpush3.bf16.msra.mxu0 %v1850_v11  ;;  %v569_v44 = vld [vmem:[%s2830_s28 + $0x308] sm:$0xff]  ;;  %v586_v47 = vld [vmem:[%s2830_s28 + $0x390] sm:$0xff]  ;;  %v587_v48 = vld [vmem:[%s2830_s28 + $0x398] sm:$0xff]  ;;  %v1894_v51 = vpack.c.bf16 %v537_v41, %v536_v40  ;;  %v1896_v53 = vpack.c.bf16 %v555_v46, %v554_v45 }
 0x108   : > { %1883 = vmatpush3.bf16.msra.mxu1 %v1882_v14  ;;  %1853 = vmatprep.subr.bf16.mxu0 %v1852_v15  ;;  %v460_v49 = vld [vmem:[%s2856_s29] sm:$0xff]  ;;  %v462_v50 = vld [vmem:[%s2856_s29 + $0x10] sm:$0xff]  ;;  %v1926_v52 = vpack.c.bf16 %v569_v44, %v568_v42  ;;  %v538_v54 = vld [vmem:[%s2830_s28 + $0x210] sm:$0xff]  ;;  %v1928_v57 = vpack.c.bf16 %v587_v48, %v586_v47 }
 0x109   : > { %1885 = vmatprep.subr.bf16.mxu1 %v1884_v19  ;;  %v539_v55 = vld [vmem:[%s2830_s28 + $0x218] sm:$0xff]  ;;  %v570_v56 = vld [vmem:[%s2830_s28 + $0x310] sm:$0xff]  ;;  %v556_v59 = vld [vmem:[%s2830_s28 + $0x2a0] sm:$0xff] }
 0x10a   : > { %v571_v58 = vld [vmem:[%s2830_s28 + $0x318] sm:$0xff]  ;;  %v557_v60 = vld [vmem:[%s2830_s28 + $0x2a8] sm:$0xff]  ;;  %v588_v61 = vld [vmem:[%s2830_s28 + $0x3a0] sm:$0xff]  ;;  %v1898_v63 = vpack.c.bf16 %v539_v55, %v538_v54 }
 0x10b   : > { %1855 = vmatpush3.bf16.msra.mxu0 %v1854_v25  ;;  %v589_v62 = vld [vmem:[%s2830_s28 + $0x3a8] sm:$0xff]  ;;  %v1930_v0 = vpack.c.bf16 %v571_v58, %v570_v56  ;;  %v1900_v1 = vpack.c.bf16 %v557_v60, %v556_v59  ;;  %v540_v2 = vld [vmem:[%s2830_s28 + $0x220] sm:$0xff]  ;;  %v558_v7 = vld [vmem:[%s2830_s28 + $0x2b0] sm:$0xff] }
 0x10c   : > { %1887 = vmatpush3.bf16.msra.mxu1 %v1886_v26  ;;  %1857 = vmatprep.subr.bf16.mxu0 %v1856_v27  ;;  %v541_v3 = vld [vmem:[%s2830_s28 + $0x228] sm:$0xff]  ;;  %v572_v4 = vld [vmem:[%s2830_s28 + $0x320] sm:$0xff]  ;;  %v1932_v5 = vpack.c.bf16 %v589_v62, %v588_v61  ;;  %v559_v8 = vld [vmem:[%s2830_s28 + $0x2b8] sm:$0xff] }
 0x10d   : > { %1889 = vmatprep.subr.bf16.mxu1 %v1888_v31  ;;  %v573_v6 = vld [vmem:[%s2830_s28 + $0x328] sm:$0xff]  ;;  %v590_v9 = vld [vmem:[%s2830_s28 + $0x3b0] sm:$0xff]  ;;  %v591_v10 = vld [vmem:[%s2830_s28 + $0x3b8] sm:$0xff]  ;;  %v1902_v11 = vpack.c.bf16 %v541_v3, %v540_v2  ;;  %v1904_v13 = vpack.c.bf16 %v559_v8, %v558_v7 }
 0x10e   : > { %v1934_v12 = vpack.c.bf16 %v573_v6, %v572_v4  ;;  %v542_v14 = vld [vmem:[%s2830_s28 + $0x230] sm:$0xff]  ;;  %v543_v15 = vld [vmem:[%s2830_s28 + $0x238] sm:$0xff]  ;;  %v1936_v17 = vpack.c.bf16 %v591_v10, %v590_v9  ;;  %v560_v19 = vld [vmem:[%s2830_s28 + $0x2c0] sm:$0xff] }
 0x10f   : > { %1859 = vmatpush3.bf16.msra.mxu0 %v1858_v37  ;;  %v574_v16 = vld [vmem:[%s2830_s28 + $0x330] sm:$0xff]  ;;  %v575_v18 = vld [vmem:[%s2830_s28 + $0x338] sm:$0xff]  ;;  %v561_v20 = vld [vmem:[%s2830_s28 + $0x2c8] sm:$0xff]  ;;  %v1906_v23 = vpack.c.bf16 %v543_v15, %v542_v14 }
 0x110   : > { %1891 = vmatpush3.bf16.msra.mxu1 %v1890_v38  ;;  %1893 = vmatprep.subr.bf16.mxu0 %v1892_v39  ;;  %v592_v21 = vld [vmem:[%s2830_s28 + $0x3c0] sm:$0xff]  ;;  %v593_v22 = vld [vmem:[%s2830_s28 + $0x3c8] sm:$0xff]  ;;  %v1938_v26 = vpack.c.bf16 %v575_v18, %v574_v16  ;;  %v1908_v27 = vpack.c.bf16 %v561_v20, %v560_v19  ;;  %v467_v30 = vld [vmem:[%s2856_s29 + $0x38] sm:$0xff] }
 0x111   : > { %1925 = vmatprep.subr.bf16.mxu1 %v1924_v43  ;;  %v544_v24 = vld [vmem:[%s2830_s28 + $0x240] sm:$0xff]  ;;  %v545_v28 = vld [vmem:[%s2830_s28 + $0x248] sm:$0xff]  ;;  %v1940_v31 = vpack.c.bf16 %v593_v22, %v592_v21  ;;  %v562_v33 = vld [vmem:[%s2830_s28 + $0x2d0] sm:$0xff] }
 0x112   : > { %729 = vmatmul.mubr.f32.vlgmr.msra.gmra.mrb[0].mxu0 %v460_v49  ;;  %v465_v25 = vld [vmem:[%s2856_s29 + $0x28] sm:$0xff]  ;;  %v577_v32 = vld [vmem:[%s2830_s28 + $0x348] sm:$0xff]  ;;  %v563_v34 = vld [vmem:[%s2830_s28 + $0x2d8] sm:$0xff]  ;;  %v1910_v37 = vpack.c.bf16 %v545_v28, %v544_v24 }
 0x113   : > { %799 = vmatmul.mubr.f32.vlgmr.msra.gmra.mrb[0].mxu1 %v462_v50  ;;  %1895 = vmatpush3.bf16.msra.mxu0 %v1894_v51  ;;  %v576_v29 = vld [vmem:[%s2830_s28 + $0x340] sm:$0xff]  ;;  %v594_v35 = vld [vmem:[%s2830_s28 + $0x3d0] sm:$0xff]  ;;  %v595_v36 = vld [vmem:[%s2830_s28 + $0x3d8] sm:$0xff]  ;;  %v1912_v39 = vpack.c.bf16 %v563_v34, %v562_v33 }
 0x114   : > { %1927 = vmatpush3.bf16.msra.mxu1 %v1926_v52  ;;  %1897 = vmatprep.subr.bf16.mxu0 %v1896_v53  ;;  %v1942_v38 = vpack.c.bf16 %v577_v32, %v576_v29  ;;  %v546_v40 = vld [vmem:[%s2830_s28 + $0x250] sm:$0xff]  ;;  %v547_v41 = vld [vmem:[%s2830_s28 + $0x258] sm:$0xff]  ;;  %v1944_v43 = vpack.c.bf16 %v595_v36, %v594_v35  ;;  %v564_v45 = vld [vmem:[%s2830_s28 + $0x2e0] sm:$0xff] }
 0x115   : > { %1929 = vmatprep.subr.bf16.mxu1 %v1928_v57  ;;  %868 = vmatprep.mubr.f32.mxu0 %v465_v25  ;;  %v578_v42 = vld [vmem:[%s2830_s28 + $0x350] sm:$0xff]  ;;  %v579_v44 = vld [vmem:[%s2830_s28 + $0x358] sm:$0xff]  ;;  %v565_v46 = vld [vmem:[%s2830_s28 + $0x2e8] sm:$0xff]  ;;  %v1914_v49 = vpack.c.bf16 %v547_v41, %v546_v40 }
 0x116   : > { %938 = vmatprep.mubr.f32.mxu1 %v467_v30  ;;  %v596_v47 = vld [vmem:[%s2830_s28 + $0x3e0] sm:$0xff]  ;;  %v597_v48 = vld [vmem:[%s2830_s28 + $0x3e8] sm:$0xff]  ;;  %v1946_v50 = vpack.c.bf16 %v579_v44, %v578_v42  ;;  %v1916_v51 = vpack.c.bf16 %v565_v46, %v564_v45  ;;  %v566_v57 = vld [vmem:[%s2830_s28 + $0x2f0] sm:$0xff] }
 0x117   : > { %1899 = vmatpush3.bf16.msra.mxu0 %v1898_v63  ;;  %v548_v52 = vld [vmem:[%s2830_s28 + $0x260] sm:$0xff]  ;;  %v549_v53 = vld [vmem:[%s2830_s28 + $0x268] sm:$0xff]  ;;  %v1948_v55 = vpack.c.bf16 %v597_v48, %v596_v47  ;;  %v567_v58 = vld [vmem:[%s2830_s28 + $0x2f8] sm:$0xff] }
 0x118   : > { %1931 = vmatpush3.bf16.msra.mxu1 %v1930_v0  ;;  %1901 = vmatprep.subr.bf16.mxu0 %v1900_v1  ;;  %v580_v54 = vld [vmem:[%s2830_s28 + $0x360] sm:$0xff]  ;;  %v581_v56 = vld [vmem:[%s2830_s28 + $0x368] sm:$0xff]  ;;  %v598_v59 = vld [vmem:[%s2830_s28 + $0x3f0] sm:$0xff]  ;;  %v1918_v61 = vpack.c.bf16 %v549_v53, %v548_v52  ;;  %v1920_v63 = vpack.c.bf16 %v567_v58, %v566_v57 }
 0x119   : > { %1933 = vmatprep.subr.bf16.mxu1 %v1932_v5  ;;  %v599_v60 = vld [vmem:[%s2830_s28 + $0x3f8] sm:$0xff]  ;;  %v1950_v62 = vpack.c.bf16 %v581_v56, %v580_v54  ;;  %v550_v0 = vld [vmem:[%s2830_s28 + $0x270] sm:$0xff]  ;;  %v616_v5 = vld [vmem:[%s2830_s28 + $0x480] sm:$0xff] }
 0x11a   : > { %v551_v1 = vld [vmem:[%s2830_s28 + $0x278] sm:$0xff]  ;;  %v582_v2 = vld [vmem:[%s2830_s28 + $0x370] sm:$0xff]  ;;  %v1952_v3 = vpack.c.bf16 %v599_v60, %v598_v59  ;;  %v617_v6 = vld [vmem:[%s2830_s28 + $0x488] sm:$0xff] }
 0x11b   : > { %1903 = vmatpush3.bf16.msra.mxu0 %v1902_v11  ;;  %v583_v4 = vld [vmem:[%s2830_s28 + $0x378] sm:$0xff]  ;;  %v648_v7 = vld [vmem:[%s2830_s28 + $0x580] sm:$0xff]  ;;  %v649_v8 = vld [vmem:[%s2830_s28 + $0x588] sm:$0xff]  ;;  %v1922_v9 = vpack.c.bf16 %v551_v1, %v550_v0  ;;  %v1956_v11 = vpack.c.bf16 %v617_v6, %v616_v5 }
 0x11c   : > { %1935 = vmatpush3.bf16.msra.mxu1 %v1934_v12  ;;  %1905 = vmatprep.subr.bf16.mxu0 %v1904_v13  ;;  %v1954_v10 = vpack.c.bf16 %v583_v4, %v582_v2  ;;  %v600_v12 = vld [vmem:[%s2830_s28 + $0x400] sm:$0xff]  ;;  %v601_v13 = vld [vmem:[%s2830_s28 + $0x408] sm:$0xff]  ;;  %v1988_v15 = vpack.c.bf16 %v649_v8, %v648_v7  ;;  %v619_v18 = vld [vmem:[%s2830_s28 + $0x498] sm:$0xff] }
 0x11d   : > { %1937 = vmatprep.subr.bf16.mxu1 %v1936_v17  ;;  %v632_v14 = vld [vmem:[%s2830_s28 + $0x500] sm:$0xff]  ;;  %v633_v16 = vld [vmem:[%s2830_s28 + $0x508] sm:$0xff]  ;;  %v618_v17 = vld [vmem:[%s2830_s28 + $0x490] sm:$0xff]  ;;  %v1958_v22 = vpack.c.bf16 %v601_v13, %v600_v12 }
 0x11e   : > { %v650_v19 = vld [vmem:[%s2830_s28 + $0x590] sm:$0xff]  ;;  %v651_v20 = vld [vmem:[%s2830_s28 + $0x598] sm:$0xff]  ;;  %v1990_v24 = vpack.c.bf16 %v633_v16, %v632_v14  ;;  %v1960_v25 = vpack.c.bf16 %v619_v18, %v618_v17  ;;  %v621_v32 = vld [vmem:[%s2830_s28 + $0x4a8] sm:$0xff] }
 0x11f   : > { %1907 = vmatpush3.bf16.msra.mxu0 %v1906_v23  ;;  %v464_v21 = vld [vmem:[%s2856_s29 + $0x20] sm:$0xff]  ;;  %v466_v23 = vld [vmem:[%s2856_s29 + $0x30] sm:$0xff]  ;;  %v634_v28 = vld [vmem:[%s2830_s28 + $0x510] sm:$0xff]  ;;  %v1992_v29 = vpack.c.bf16 %v651_v20, %v650_v19 }
 0x120   : > { %1939 = vmatpush3.bf16.msra.mxu1 %v1938_v26  ;;  %1909 = vmatprep.subr.bf16.mxu0 %v1908_v27  ;;  %v602_v26 = vld [vmem:[%s2830_s28 + $0x410] sm:$0xff]  ;;  %v603_v27 = vld [vmem:[%s2830_s28 + $0x418] sm:$0xff]  ;;  %v652_v33 = vld [vmem:[%s2830_s28 + $0x5a0] sm:$0xff] }
 0x121   : > { %1941 = vmatprep.subr.bf16.mxu1 %v1940_v31  ;;  %v635_v30 = vld [vmem:[%s2830_s28 + $0x518] sm:$0xff]  ;;  %v620_v31 = vld [vmem:[%s2830_s28 + $0x4a0] sm:$0xff]  ;;  %v653_v34 = vld [vmem:[%s2830_s28 + $0x5a8] sm:$0xff]  ;;  %v1962_v36 = vpack.c.bf16 %v603_v27, %v602_v26 }
 0x122   : > { %v469_v35 = vld [vmem:[%s2856_s29 + $0x48] sm:$0xff]  ;;  %v605_v41 = vld [vmem:[%s2830_s28 + $0x428] sm:$0xff]  ;;  %v622_v45 = vld [vmem:[%s2830_s28 + $0x4b0] sm:$0xff] }
 0x123   : > { %1911 = vmatpush3.bf16.msra.mxu0 %v1910_v37  ;;  %v471_v37 = vld [vmem:[%s2856_s29 + $0x58] sm:$0xff]  ;;  %v604_v40 = vld [vmem:[%s2830_s28 + $0x420] sm:$0xff]  ;;  %v637_v44 = vld [vmem:[%s2830_s28 + $0x528] sm:$0xff] }
 0x124   : > { %1943 = vmatpush3.bf16.msra.mxu1 %v1942_v38  ;;  %1913 = vmatprep.subr.bf16.mxu0 %v1912_v39  ;;  %v1994_v38 = vpack.c.bf16 %v635_v30, %v634_v28  ;;  %v1964_v39 = vpack.c.bf16 %v621_v32, %v620_v31  ;;  %v636_v42 = vld [vmem:[%s2830_s28 + $0x520] sm:$0xff]  ;;  %v623_v46 = vld [vmem:[%s2830_s28 + $0x4b8] sm:$0xff]  ;;  %v654_v47 = vld [vmem:[%s2830_s28 + $0x5b0] sm:$0xff] }
 0x125   : > { %1945 = vmatprep.subr.bf16.mxu1 %v1944_v43  ;;  %v1996_v43 = vpack.c.bf16 %v653_v34, %v652_v33  ;;  %v655_v48 = vld [vmem:[%s2830_s28 + $0x5b8] sm:$0xff]  ;;  %v606_v52 = vld [vmem:[%s2830_s28 + $0x430] sm:$0xff]  ;;  %v624_v57 = vld [vmem:[%s2830_s28 + $0x4c0] sm:$0xff] }
 0x126   : > { %v607_v53 = vld [vmem:[%s2830_s28 + $0x438] sm:$0xff]  ;;  %v638_v54 = vld [vmem:[%s2830_s28 + $0x530] sm:$0xff]  ;;  %v625_v58 = vld [vmem:[%s2830_s28 + $0x4c8] sm:$0xff] }
 0x127   : > { %1915 = vmatpush3.bf16.msra.mxu0 %v1914_v49  ;;  %v1966_v49 = vpack.c.bf16 %v605_v41, %v604_v40  ;;  %v639_v56 = vld [vmem:[%s2830_s28 + $0x538] sm:$0xff]  ;;  %v656_v59 = vld [vmem:[%s2830_s28 + $0x5c0] sm:$0xff]  ;;  %v657_v60 = vld [vmem:[%s2830_s28 + $0x5c8] sm:$0xff] }
 0x128   : > { %1947 = vmatpush3.bf16.msra.mxu1 %v1946_v50  ;;  %1917 = vmatprep.subr.bf16.mxu0 %v1916_v51  ;;  %v1998_v50 = vpack.c.bf16 %v637_v44, %v636_v42  ;;  %v1968_v51 = vpack.c.bf16 %v623_v46, %v622_v45  ;;  %v608_v0 = vld [vmem:[%s2830_s28 + $0x440] sm:$0xff]  ;;  %v609_v1 = vld [vmem:[%s2830_s28 + $0x448] sm:$0xff]  ;;  %v626_v5 = vld [vmem:[%s2830_s28 + $0x4d0] sm:$0xff] }
 0x129   : > { %1949 = vmatprep.subr.bf16.mxu1 %v1948_v55  ;;  %v2000_v55 = vpack.c.bf16 %v655_v48, %v654_v47  ;;  %v640_v2 = vld [vmem:[%s2830_s28 + $0x540] sm:$0xff]  ;;  %v641_v4 = vld [vmem:[%s2830_s28 + $0x548] sm:$0xff]  ;;  %v627_v6 = vld [vmem:[%s2830_s28 + $0x4d8] sm:$0xff] }
 0x12a   : > { %v658_v7 = vld [vmem:[%s2830_s28 + $0x5d0] sm:$0xff]  ;;  %v659_v8 = vld [vmem:[%s2830_s28 + $0x5d8] sm:$0xff]  ;;  %v628_v17 = vld [vmem:[%s2830_s28 + $0x4e0] sm:$0xff] }
 0x12b   : > { %1919 = vmatpush3.bf16.msra.mxu0 %v1918_v61  ;;  %v1970_v61 = vpack.c.bf16 %v607_v53, %v606_v52  ;;  %v610_v12 = vld [vmem:[%s2830_s28 + $0x450] sm:$0xff]  ;;  %v611_v13 = vld [vmem:[%s2830_s28 + $0x458] sm:$0xff]  ;;  %v629_v18 = vld [vmem:[%s2830_s28 + $0x4e8] sm:$0xff] }
 0x12c   : > { %1951 = vmatpush3.bf16.msra.mxu1 %v1950_v62  ;;  %1921 = vmatprep.subr.bf16.mxu0 %v1920_v63  ;;  %v2002_v62 = vpack.c.bf16 %v639_v56, %v638_v54  ;;  %v1972_v63 = vpack.c.bf16 %v625_v58, %v624_v57  ;;  %v642_v14 = vld [vmem:[%s2830_s28 + $0x550] sm:$0xff]  ;;  %v643_v16 = vld [vmem:[%s2830_s28 + $0x558] sm:$0xff]  ;;  %v660_v19 = vld [vmem:[%s2830_s28 + $0x5e0] sm:$0xff] }
 0x12d   : > { %1953 = vmatprep.subr.bf16.mxu1 %v1952_v3  ;;  %v2004_v3 = vpack.c.bf16 %v657_v60, %v656_v59  ;;  %v661_v20 = vld [vmem:[%s2830_s28 + $0x5e8] sm:$0xff]  ;;  %v644_v26 = vld [vmem:[%s2830_s28 + $0x560] sm:$0xff]  ;;  %v631_v30 = vld [vmem:[%s2830_s28 + $0x4f8] sm:$0xff] }
 0x12e   : > { %v2012_v27 = vpack.c.bf16 %v661_v20, %v660_v19  ;;  %v645_v28 = vld [vmem:[%s2830_s28 + $0x568] sm:$0xff]  ;;  %v662_v31 = vld [vmem:[%s2830_s28 + $0x5f0] sm:$0xff]  ;;  %v663_v32 = vld [vmem:[%s2830_s28 + $0x5f8] sm:$0xff] }
 0x12f   : > { %1923 = vmatpush3.bf16.msra.mxu0 %v1922_v9  ;;  %v1974_v9 = vpack.c.bf16 %v609_v1, %v608_v0  ;;  %v2014_v34 = vpack.c.bf16 %v645_v28, %v644_v26  ;;  %v647_v40 = vld [vmem:[%s2830_s28 + $0x578] sm:$0xff]  ;;  %v470_v44 = vld [vmem:[%s2856_s29 + $0x50] sm:$0xff] }
 0x130   : > { %1955 = vmatpush3.bf16.msra.mxu1 %v1954_v10  ;;  %1957 = vmatprep.subr.bf16.mxu0 %v1956_v11  ;;  %v2006_v10 = vpack.c.bf16 %v641_v4, %v640_v2  ;;  %v1976_v11 = vpack.c.bf16 %v627_v6, %v626_v5  ;;  %v1131_v6 = vld [vmem:[#allocation9] sm:$0xff] (!%p1507_p5)  ;;  %v1137_v20 = vld [vmem:[#allocation9 + $0x30] sm:$0xff] (!%p1507_p5)  ;;  %v1140_v28 = vld [vmem:[#allocation9 + $0x48] sm:$0xff] (!%p1507_p5) }
 0x131   : > { %1989 = vmatprep.subr.bf16.mxu1 %v1988_v15  ;;  %v2008_v15 = vpack.c.bf16 %v659_v8, %v658_v7  ;;  %v1132_v7 = vld [vmem:[#allocation9 + $0x8] sm:$0xff] (!%p1507_p5)  ;;  %v1133_v8 = vld [vmem:[#allocation9 + $0x10] sm:$0xff] (!%p1507_p5) }
 0x132   : > { %869 = vmatmul.mubr.f32.vlgmr.msra.gmra.mrb[2].mxu0 %v464_v21  ;;  %v1978_v21 = vpack.c.bf16 %v611_v13, %v610_v12  ;;  %v2518_v12 = vmov (!%p1507_p5), 0.0  }
 0x133   : > { %1959 = vmatpush3.bf16.msra.mxu0 %v1958_v22  ;;  %939 = vmatmul.mubr.f32.vlgmr.msra.gmra.mrb[2].mxu1 %v466_v23  ;;  %v2010_v22 = vpack.c.bf16 %v643_v16, %v642_v14  ;;  %v1980_v23 = vpack.c.bf16 %v629_v18, %v628_v17  ;;  %v1135_v14 = vld [vmem:[#allocation9 + $0x20] sm:$0xff] (!%p1507_p5) }
 0x134   : > { %1991 = vmatpush3.bf16.msra.mxu1 %v1990_v24  ;;  %1961 = vmatprep.subr.bf16.mxu0 %v1960_v25  ;;  %v612_v24 = vld [vmem:[%s2830_s28 + $0x460] sm:$0xff]  ;;  %v613_v25 = vld [vmem:[%s2830_s28 + $0x468] sm:$0xff] }
 0x135   : > { %1993 = vmatprep.subr.bf16.mxu1 %v1992_v29  ;;  %1008 = vmatprep.mubr.f32.mxu0 %v469_v35  ;;  %v630_v29 = vld [vmem:[%s2830_s28 + $0x4f0] sm:$0xff]  ;;  %v1982_v33 = vpack.c.bf16 %v613_v25, %v612_v24 }
 0x136   : > { %1078 = vmatprep.mubr.f32.mxu1 %v471_v37  ;;  %v1984_v35 = vpack.c.bf16 %v631_v30, %v630_v29  ;;  %v615_v37 = vld [vmem:[%s2830_s28 + $0x478] sm:$0xff] }
 0x137   : > { %1963 = vmatpush3.bf16.msra.mxu0 %v1962_v36  ;;  %v614_v36 = vld [vmem:[%s2830_s28 + $0x470] sm:$0xff] }
 0x138   : > { %1995 = vmatpush3.bf16.msra.mxu1 %v1994_v38  ;;  %1965 = vmatprep.subr.bf16.mxu0 %v1964_v39  ;;  %v2016_v38 = vpack.c.bf16 %v663_v32, %v662_v31  ;;  %v646_v39 = vld [vmem:[%s2830_s28 + $0x570] sm:$0xff]  ;;  %v1986_v41 = vpack.c.bf16 %v615_v37, %v614_v36 }
 0x139   : > { %1997 = vmatprep.subr.bf16.mxu1 %v1996_v43  ;;  %v2018_v42 = vpack.c.bf16 %v647_v40, %v646_v39  ;;  %v468_v43 = vld [vmem:[%s2856_s29 + $0x40] sm:$0xff] }
 0x13b   : > { %1967 = vmatpush3.bf16.msra.mxu0 %v1966_v49 }
 0x13c   : > { %1999 = vmatpush3.bf16.msra.mxu1 %v1998_v50  ;;  %1969 = vmatprep.subr.bf16.mxu0 %v1968_v51 }
 0x13d   : > { %2001 = vmatprep.subr.bf16.mxu1 %v2000_v55 }
 0x13f   : > { %1971 = vmatpush3.bf16.msra.mxu0 %v1970_v61 }
 0x140   : > { %2003 = vmatpush3.bf16.msra.mxu1 %v2002_v62  ;;  %1973 = vmatprep.subr.bf16.mxu0 %v1972_v63 }
 0x141   : > { %2005 = vmatprep.subr.bf16.mxu1 %v2004_v3  ;;  %v459_v3 = vld [vmem:[#allocation2] sm:$0xff] }
 0x143   : > { %1975 = vmatpush3.bf16.msra.mxu0 %v1974_v9  ;;  %v2516_v9 = vmov (!%p1507_p5), 0.0|0.0  }
 0x144   : > { %2007 = vmatpush3.bf16.msra.mxu1 %v2006_v10  ;;  %1977 = vmatprep.subr.bf16.mxu0 %v1976_v11  ;;  %v2021_v10 = vpack.c.bf16 (!%p1507_p5), %v1132_v7, %v1131_v6  ;;  %v1134_v11 = vld [vmem:[#allocation9 + $0x18] sm:$0xff] (!%p1507_p5)  ;;  %v1260_v7 = vld [vmem:[#allocation14 + $0x20] sm:$0xff] (!%p1507_p5) }
 0x145   : > { %2009 = vmatprep.subr.bf16.mxu1 %v2008_v15  ;;  %v2024_v13 = vpack.c.bf16 (!%p1507_p5), %v1134_v11, %v1133_v8  ;;  %v1136_v15 = vld [vmem:[#allocation9 + $0x28] sm:$0xff] (!%p1507_p5)  ;;  %v1262_v11 = vld [vmem:[#allocation14 + $0x30] sm:$0xff] (!%p1507_p5) }
 0x146   : > { %v2027_v19 = vpack.c.bf16 (!%p1507_p5), %v1136_v15, %v1135_v14  ;;  %v1261_v8 = vld [vmem:[#allocation14 + $0x28] sm:$0xff] (!%p1507_p5)  ;;  %v1264_v14 = vld [vmem:[#allocation14 + $0x40] sm:$0xff] (!%p1507_p5) }
 0x147   : > { %1979 = vmatpush3.bf16.msra.mxu0 %v1978_v21  ;;  %v1138_v21 = vld [vmem:[#allocation9 + $0x38] sm:$0xff] (!%p1507_p5)  ;;  %v1265_v15 = vld [vmem:[#allocation14 + $0x48] sm:$0xff] (!%p1507_p5) }
 0x148   : > { %2011 = vmatpush3.bf16.msra.mxu1 %v2010_v22  ;;  %1981 = vmatprep.subr.bf16.mxu0 %v1980_v23  ;;  %v2030_v26 = vpack.c.bf16 (!%p1507_p5), %v1138_v21, %v1137_v20  ;;  %v1268_v20 = vld [vmem:[#allocation14 + $0x60] sm:$0xff] (!%p1507_p5)  ;;  %v1269_v21 = vld [vmem:[#allocation14 + $0x68] sm:$0xff] (!%p1507_p5) }
 0x149   : > { %2013 = vmatprep.subr.bf16.mxu1 %v2012_v27  ;;  %v1139_v27 = vld [vmem:[#allocation9 + $0x40] sm:$0xff] (!%p1507_p5) }
 0x14b   : > { %1983 = vmatpush3.bf16.msra.mxu0 %v1982_v33  ;;  %v2033_v33 = vpack.c.bf16 (!%p1507_p5), %v1140_v28, %v1139_v27 }
 0x14c   : > { %2015 = vmatpush3.bf16.msra.mxu1 %v2014_v34  ;;  %1985 = vmatprep.subr.bf16.mxu0 %v1984_v35  ;;  %v1141_v34 = vld [vmem:[#allocation9 + $0x50] sm:$0xff] (!%p1507_p5)  ;;  %v1142_v35 = vld [vmem:[#allocation9 + $0x58] sm:$0xff] (!%p1507_p5) }
 0x14d   : > { %2017 = vmatprep.subr.bf16.mxu1 %v2016_v38  ;;  %v2036_v40 = vpack.c.bf16 (!%p1507_p5), %v1142_v35, %v1141_v34 }
 0x14f   : > { %1987 = vmatpush3.bf16.msra.mxu0 %v1986_v41  ;;  %v1143_v41 = vld [vmem:[#allocation9 + $0x60] sm:$0xff] (!%p1507_p5) }
 0x150   : > { %2019 = vmatpush3.bf16.msra.mxu1 %v2018_v42  ;;  %2020 = vmatprep.subr.bf16.mxu0 (!%p1507_p5), %v2516_v9  ;;  %v1144_v42 = vld [vmem:[#allocation9 + $0x68] sm:$0xff] (!%p1507_p5) }
 0x151   : > { %2044 = vmatprep.subr.bf16.mxu1 (!%p1507_p5), %v2516_v9 }
 0x152   : > { %1009 = vmatmul.mubr.f32.vlgmr.msra.gmra.mrb[4].mxu0 %v468_v43 }
 0x153   : > { %1079 = vmatmul.mubr.f32.vlgmr.msra.gmra.mrb[4].mxu1 %v470_v44  ;;  %1790 = vmatprep.mubr.msk.f32.mxu0 (!%p1507_p5), %vm2517_vm0, %v2518_v12 }
 0x154   : > { %1825 = vmatprep.mubr.msk.f32.mxu1 (!%p1507_p5), %vm2517_vm0, %v2518_v12  ;;  %2022 = vmatpush3.bf16.msra.mxu0 (!%p1507_p5), %v2021_v10  ;;  %v2051_v10 = vpack.c.bf16 (!%p1507_p5), %v1261_v8, %v1260_v7  ;;  %v1263_v12 = vld [vmem:[#allocation14 + $0x38] sm:$0xff] (!%p1507_p5) }
 0x155   : > { %2023 = vmatprep.subr.bf16.mxu0 (!%p1507_p5), %v2516_v9 }
 0x158   : > { %2025 = vmatpush3.bf16.msra.mxu0 (!%p1507_p5), %v2024_v13  ;;  %v2054_v13 = vpack.c.bf16 (!%p1507_p5), %v1263_v12, %v1262_v11 }
 0x159   : > { %2026 = vmatprep.subr.bf16.mxu0 (!%p1507_p5), %v2516_v9 }
 0x15c   : > { %2028 = vmatpush3.bf16.msra.mxu0 (!%p1507_p5), %v2027_v19 }
 0x15d   : > { %2029 = vmatprep.subr.bf16.mxu0 (!%p1507_p5), %v2516_v9 }
 0x160   : > { %2031 = vmatpush3.bf16.msra.mxu0 (!%p1507_p5), %v2030_v26 }
 0x161   : > { %2032 = vmatprep.subr.bf16.mxu0 (!%p1507_p5), %v2516_v9 }
 0x164   : > { %2034 = vmatpush3.bf16.msra.mxu0 (!%p1507_p5), %v2033_v33 }
 0x165   : > { %2035 = vmatprep.subr.bf16.mxu0 (!%p1507_p5), %v2516_v9 }
 0x168   : > { %2037 = vmatpush3.bf16.msra.mxu0 (!%p1507_p5), %v2036_v40 }
 0x169   : > { %2038 = vmatprep.subr.bf16.mxu0 (!%p1507_p5), %v2516_v9 }
 0x1e5   : > { %v1546_v45 = vpop.f32.mrb[0].mxu0 }
 0x1e6   : > { %v1581_v46 = vpop.f32.mrb[0].mxu1  ;;  %v1547_v47 = vpop.f32.mrb[1].mxu0 }
 0x1e7   : > { %v1548_v48 = vadd.f32 %v1547_v47, %v1546_v45  ;;  %v1582_v49 = vpop.f32.mrb[1].mxu1  ;;  %v1145_v47 = vld [vmem:[#allocation9 + $0x70] sm:$0xff] (!%p1507_p5) }
 0x1e8   : > { %v1583_v50 = vadd.f32 %v1582_v49, %v1581_v46  ;;  %v2039_v46 = vpack.c.bf16 (!%p1507_p5), %v1144_v42, %v1143_v41 }
 0x1ea   : > { %v801_v51 = vadd.f32 %v1583_v50, %v1548_v48  ;;  %v1146_v48 = vld [vmem:[#allocation9 + $0x78] sm:$0xff] (!%p1507_p5)  ;;  %2040 = vmatpush3.bf16.msra.mxu0 (!%p1507_p5), %v2039_v46 }
 0x1eb   : > { %v2042_v50 = vpack.c.bf16 (!%p1507_p5), %v1146_v48, %v1145_v47  ;;  %2041 = vmatprep.subr.bf16.mxu0 (!%p1507_p5), %v2516_v9  ;;  %v1238_v48 = vld [vmem:[#allocation12] sm:$0x1] (!%p1507_p5) }
 0x1ee   : > { %2043 = vmatpush3.bf16.msra.mxu0 (!%p1507_p5), %v2042_v50 }
 0x205   : > { %v1616_v52 = vpop.f32.mrb[2].mxu0 }
 0x206   : > { %v1617_v53 = vpop.f32.mrb[3].mxu0  ;;  %v1651_v54 = vpop.f32.mrb[2].mxu1 }
 0x207   : > { %v1618_v55 = vadd.f32 %v1617_v53, %v1616_v52  ;;  %v1652_v56 = vpop.f32.mrb[3].mxu1  ;;  %v1109_v53 = vld [vmem:[#allocation6] sm:$0x1] (!%p1507_p5) }
 0x208   : > { %v1653_v57 = vadd.f32 %v1652_v56, %v1651_v54 }
 0x209   : > { %v871_v58 = vadd.f32 %v1618_v55, %v801_v51  ;;  %v1117_v51 = vlaneseq (!%p1507_p5) }
 0x20b   : > { %v941_v59 = vadd.f32 %v1653_v57, %v871_v58  ;;  %v1118_v52 = vshrl.u32 (!%p1507_p5), %v1117_v51, 7  ;;  %v1113_v57 = vld [vmem:[#allocation8] sm:$0x1] (!%p1507_p5) }
 0x20d   : > { %v3074_v54 = vsub.s32 (!%p1507_p5), 0, %v1118_v52 }
 0x225   : > { %v1686_v60 = vpop.f32.mrb[4].mxu0 }
 0x226   : > { %v1687_v61 = vpop.f32.mrb[5].mxu0  ;;  %v1721_v62 = vpop.f32.mrb[4].mxu1 }
 0x227   : > { %v1688_v63 = vadd.f32 %v1687_v61, %v1686_v60  ;;  %v1722_v0 = vpop.f32.mrb[5].mxu1 }
 0x228   : > { %v1723_v1 = vadd.f32 %v1722_v0, %v1721_v62 }
 0x229   : > { %v1011_v2 = vadd.f32 %v1688_v63, %v941_v59  ;;  %1089 = sbr.rel (%p1507_p5) target bundleno = 1080 (0x438), region = 96 }
 0x22b   : > { %v1081_v4 = vadd.f32 %v1723_v1, %v1011_v2  ;;  %v1256_v1 = vld [vmem:[#allocation14] sm:$0xff] (!%p1507_p5)  ;;  %v1257_v2 = vld [vmem:[#allocation14 + $0x8] sm:$0xff] (!%p1507_p5) }
 0x22d   : > { %v1084_v5 = vadd.f32 %v1081_v4, %v459_v3  ;;  %v2045_v3 = vpack.c.bf16 (!%p1507_p5), %v1257_v2, %v1256_v1  ;;  %v1258_v4 = vld [vmem:[#allocation14 + $0x10] sm:$0xff] (!%p1507_p5) }
 0x22f   : > { %1085 = vst [vmem:[#allocation2] sm:$0xff] %v1084_v5  ;;  %2046 = vmatpush3.bf16.msra.mxu1 (!%p1507_p5), %v2045_v3  ;;  %v1259_v5 = vld [vmem:[#allocation14 + $0x18] sm:$0xff] (!%p1507_p5) }
 0x230   : > { %2047 = vmatprep.subr.bf16.mxu1 %v2516_v9  ;;  %v2048_v6 = vpack.c.bf16 %v1259_v5, %v1258_v4 }
 0x233   : > { %2049 = vmatpush3.bf16.msra.mxu1 %v2048_v6 }
 0x234   : > { %2050 = vmatprep.subr.bf16.mxu1 %v2516_v9 }
 0x236   : > { %v1090_v16 = vld [vmem:[#allocation2] sm:$0xff] }
 0x237   : > { %v1091_v17 = vrot.slane %v1090_v16, 4  ;;  %v1099_v18 = vmul.f32 %v1090_v16, %v1090_v16  ;;  %2052 = vmatpush3.bf16.msra.mxu1 %v2051_v10 }
 0x238   : > { %2053 = vmatprep.subr.bf16.mxu1 %v2516_v9 }
 0x239   : > { %v1092_v22 = vadd.f32 %v1091_v17, %v1090_v16  ;;  %v1100_v23 = vrot.slane %v1099_v18, 4  ;;  %v1266_v17 = vld [vmem:[#allocation14 + $0x50] sm:$0xff] }
 0x23b   : > { %v1093_v24 = vrot.slane %v1092_v22, 2  ;;  %v1101_v25 = vadd.f32 %v1100_v23, %v1099_v18  ;;  %2055 = vmatpush3.bf16.msra.mxu1 %v2054_v13  ;;  %v1267_v18 = vld [vmem:[#allocation14 + $0x58] sm:$0xff]  ;;  %v1270_v23 = vld [vmem:[#allocation14 + $0x70] sm:$0xff] }
 0x23c   : > { %2056 = vmatprep.subr.bf16.mxu1 %v2516_v9  ;;  %v2060_v19 = vpack.c.bf16 %v1267_v18, %v1266_v17 }
 0x23d   : > { %v1094_v29 = vadd.f32 %v1093_v24, %v1092_v22  ;;  %v1102_v30 = vrot.slane %v1101_v25, 2  ;;  %v2063_v22 = vpack.c.bf16 %v1269_v21, %v1268_v20  ;;  %v1271_v24 = vld [vmem:[#allocation14 + $0x78] sm:$0xff] }
 0x23f   : > { %v1095_v31 = vrot.slane %v1094_v29, 1  ;;  %v1103_v32 = vadd.f32 %v1102_v30, %v1101_v25  ;;  %v2066_v25 = vpack.c.bf16 %v1271_v24, %v1270_v23 }
 0x241   : > { %v1096_v36 = vadd.f32 %v1095_v31, %v1094_v29  ;;  %v1104_v37 = vrot.slane %v1103_v32, 1 }
 0x243   : > { %v1098_v38 = vmul.f32 0.125, %v1096_v36  ;;  %v1105_v39 = vadd.f32 %v1104_v37, %v1103_v32 }
 0x245   : > { %v1106_v43 = vmul.f32 0.125, %v1105_v39  ;;  %v1107_v44 = vmul.f32 %v1098_v38, %v1098_v38 }
 0x247   : > { %v1108_v45 = vsub.f32 %v1106_v43, %v1107_v44 }
 0x249   : > { %v1110_v49 = vadd.f32 1e-05, %v1108_v45  ;;  %v1234_v45 = vld [vmem:[#allocation11] sm:$0x1] }
 0x24b   : > { %2193 = vrsqrt.f32 %v1110_v49 }
 0x255   : > { %v2194_v55 = vpop.eup %2193 }
 0x256   : > { %v1112_v56 = vmul.f32 %v2194_v55, %v1109_v53 }
 0x258   : > { %v1114_v58 = vmul.f32 %v1112_v56, %v1098_v38  ;;  %v1120_v59 = vrot.slane %v1112_v56, %v3074_v54 }
 0x25a   : > { %v1115_v60 = vsub.f32 %v1113_v57, %v1114_v58  ;;  %v1122_v61 = vmul.f32 %v1120_v59, %v1090_v16  ;;  %v2057_v16 = vpack.c.bf16 %v1265_v15, %v1264_v14  ;;  %v1508_v57 = vld [vmem:[#allocation15] ss:$0 sm:$0xff] }
 0x25c   : > { %v1127_v62 = vrot.slane %v1115_v60, %v3074_v54  ;;  %2058 = vmatpush3.bf16.msra.mxu1 %v2057_v16 }
 0x25d   : > { %2059 = vmatprep.subr.bf16.mxu1 %v2516_v9 }
 0x25e   : > { %v1129_v63 = vadd.f32 %v1127_v62, %v1122_v61 }
 0x260   : > { %v1130_v0 = vmax.f32 %v1129_v63, 0.0  ;;  %2061 = vmatpush3.bf16.msra.mxu1 %v2060_v19 }
 0x261   : > { %2062 = vmatprep.subr.bf16.mxu1 %v2516_v9 }
 0x262   : > { %1791 = vmatmul.mubr.f32.vlgmr.msra.gmra.mrb[0].mxu0 %v1130_v0 }
 0x264   : > { %2064 = vmatpush3.bf16.msra.mxu1 %v2063_v22 }
 0x265   : > { %2065 = vmatprep.subr.bf16.mxu1 %v2516_v9 }
 0x268   : > { %2067 = vmatpush3.bf16.msra.mxu1 %v2066_v25 }
 0x335   : > { %v1213_v26 = vpop.f32.mrb[0].mxu0 }
 0x336   : > { %v1217_v27 = vrot.slane %v1213_v26, 4  ;;  %v1224_v28 = vmul.f32 %v1213_v26, %v1213_v26  ;;  %v1792_v29 = vpop.f32.mrb[1].mxu0 }
 0x338   : > { %v1218_v30 = vadd.f32 %v1217_v27, %v1213_v26  ;;  %v1225_v31 = vrot.slane %v1224_v28, 4 }
 0x33a   : > { %v1219_v32 = vrot.slane %v1218_v30, 2  ;;  %v1226_v33 = vadd.f32 %v1225_v31, %v1224_v28 }
 0x33c   : > { %v1220_v34 = vadd.f32 %v1219_v32, %v1218_v30  ;;  %v1227_v35 = vrot.slane %v1226_v33, 2 }
 0x33e   : > { %v1221_v36 = vrot.slane %v1220_v34, 1  ;;  %v1228_v37 = vadd.f32 %v1227_v35, %v1226_v33 }
 0x340   : > { %v1222_v38 = vadd.f32 %v1221_v36, %v1220_v34  ;;  %v1229_v39 = vrot.slane %v1228_v37, 1 }
 0x342   : > { %v1223_v40 = vmul.f32 0.125, %v1222_v38  ;;  %v1230_v41 = vadd.f32 %v1229_v39, %v1228_v37 }
 0x344   : > { %v1231_v42 = vmul.f32 0.125, %v1230_v41  ;;  %v1232_v43 = vmul.f32 %v1223_v40, %v1223_v40 }
 0x346   : > { %v1233_v9 = vsub.f32 %v1231_v42, %v1232_v43 }
 0x348   : > { %v1235_v44 = vadd.f32 1e-05, %v1233_v9 }
 0x34a   : > { %2195 = vrsqrt.f32 %v1235_v44 }
 0x354   : > { %v2196_v46 = vpop.eup %2195 }
 0x355   : > { %v1237_v47 = vmul.f32 %v2196_v46, %v1234_v45 }
 0x357   : > { %v1245_v49 = vrot.slane %v1237_v47, %v3074_v54  ;;  %v1239_v50 = vmul.f32 %v1237_v47, %v1223_v40 }
 0x359   : > { %v1240_v51 = vsub.f32 %v1238_v48, %v1239_v50  ;;  %v1247_v52 = vmul.f32 %v1245_v49, %v1213_v26 }
 0x35b   : > { %v1252_v53 = vrot.slane %v1240_v51, %v3074_v54 }
 0x35d   : > { %v1254_v55 = vadd.f32 %v1252_v53, %v1247_v52 }
 0x35f   : > { %v1255_v56 = vmax.f32 %v1254_v55, 0.0 }
 0x361   : > { %1826 = vmatmul.mubr.f32.vlgmr.msra.gmra.mrb[0].mxu1 %v1255_v56 }
 0x434   : > { %v1345_v58 = vpop.f32.mrb[0].mxu1 }
 0x435   : > { %v1346_v59 = vadd.f32 %v1508_v57, %v1345_v58  ;;  %v1827_v60 = vpop.f32.mrb[1].mxu1 }
 0x437   : > { %1349 = vst [vmem:[#allocation17] sm:$0xff] %v1346_v59 }
 0x438 PF: > { %p2145_p8 = scmp.eq.s32.totalorder %s2591_s15, 1  ;;  %s2519_s30 = smov [#allocation17]  }
 0x439   : > { %s1357_s18 = sshll.u32 %s2519_s30, 4  ;;  %s1358_s18 = int_to_ptr.vmem [resolvable:$true] %s1357_s18 }
 0x43a   : > { %s2423_s12 = scalar_lea.vmem %s1358_s18, 128  ;;  %p2430_p6 = scmp.lt.s32.totalorder %s1358_s18, %s1358_s18 }
 0x43b   : > { %p2424_p7 = scmp.ne.s32.totalorder %s1358_s18, %s2423_s12  ;;  %p2431_p9 = scmp.lt.s32.totalorder %s2423_s12, %s2423_s12 }
 0x43d   : > { %p2425_p13 = pnand %p2424_p7, %p2145_p8  ;;  %p2432_p3 = por %p2431_p9, %p2430_p6 }
 0x43f   : > { %p2426_p2 = pneg %p2425_p13 }
 0x441   : > { %p2433_p1 = pnand %p2432_p3, %p2426_p2 }
 0x443   : > { %2436 = shalt.err (!%p2433_p1)
}
 0x444   : > { %s2437_s13 = scalar_lea.hbm %s3132_s9, 128 }
 0x445   : > { %p2438_p4 = scmp.ne.s32.totalorder %s3132_s9, %s2437_s13  ;;  %p2443_p12 = scmp.lt.u32.totalorder %s2437_s13, %s3132_s9 }
 0x447   : > { %p2439_p10 = pnand %p2438_p4, %p2145_p8 }
 0x449   : > { %p2440_p11 = pneg %p2439_p10 }
 0x44b   : > { %p2445_p0 = pnand %p2443_p12, %p2440_p11 }
 0x44d   : > { %2448 = shalt.err (!%p2445_p0)
}
 0x44e   : > { %2101 = dma.vmem_to_hbm [thread:$0]  (%p2145_p8), %s1358_s18, 128, %s3132_s9, [#allocation5]  }
 0x44f   : > { %2486 = dma.done.wait (%p2145_p8), [#allocation5], 128  }
 0x450   : > { %2488 = vsyncadd (%p2145_p8), [#allocation5], 4294967168 }
 0x451 PF: > { %p24_p5 = scmp.ge.s32.totalorder %s2763_s27, 4   ;;  %s3159_s30 = smov %s2495_s10 }
 0x452   : > { %s3160_s10 = smov %s2499_s11  ;;  %s3161_s11 = smov %s2774_s23 }
 0x453   : > { %s3162_s12 = smov %s2763_s27  ;;  %26 = sbr.rel (!%p24_p5) target bundleno = 10 (0xa), region = 132 }
 0x45a   :  { %1370 = vsyncpa [#allocation4], 1 }
 0x45b   :  { %1372 = vsyncpa [#allocation4 + $0x1], 1 }
 0x45c   :  { %1373 = vsyncpa [#allocation7], 1 }
 0x45d   :  { %1374 = vsyncpa [#allocation10], 1 }
 0x45e   :  { %1375 = vsyncpa [#allocation13], 1 }
 0x45f   :  { %1376 = vsyncpa [#allocation16], 1 }
 0x460   :  { %1377 = vsyncpa [#allocation5], 1 }
 0x461   :  { %1379 = vsyncpa [#allocation5 + $0x1], 1 }

</bundles_post_ra>
